<compile_context>
chip_gen: v7x
topology: tpu7x:2x2x1
jax: 0.10.0
libtpu: 0.0.40
codegen_flags: <defaults>
</compile_context>

<pallas_src>
import functools

import numpy as np
import jax
import jax.numpy as jnp
from jax.experimental import pallas as pl
from jax.experimental.pallas import tpu as pltpu

LEAKY_SLOPE = 0.2
BN_EPS = 1e-5
_FUSED_VMEM_BUDGET = 24 * 1024 * 1024   # conservative; fits v5e/v6e/v7x scoped VMEM


# ----------------------------- Pallas kernel ----------------------------------
def _dnet_fused_kernel(*refs, meta):
    """Entire DNET forward in one invocation.

    refs = (x_ref, *per_layer_refs, out_ref), all whole-array VMEM refs.
      non-BN layer refs: (conv_matrix, bias_columns)
      BN layer refs:     (conv_matrix, R, R^T)
    conv_matrix: (Hin*Win*Cin, OH*OW*Cout) bf16 -- fused im2col gather + weights.
    R: (OH*OW*Cout, Cout) f32 0/1 matrix mapping columns -> channels.
    """
    out_ref = refs[-1]
    a = refs[0][...]                                   # (N, H*W*Cin) f32
    idx = 1
    for lm in meta:
        w = refs[idx][...]; idx += 1                   # (K, O*D) bf16
        y = jnp.dot(a.astype(jnp.bfloat16), w,
                    preferred_element_type=jnp.float32)   # (N, O*D) f32
        if lm["bn"]:
            R = refs[idx][...]                         # (O*D, D) f32
            RT = refs[idx + 1][...]                    # (D, O*D) f32
            idx += 2
            inv_count = lm["inv_count"]                # 1 / (N*OH*OW), static
            # Per-channel mean over (N, OH, OW): reduce rows, then fold the
            # o-part of the columns with the constant R matrix (plain matmul).
            mean = jnp.dot(jnp.sum(y, axis=0, keepdims=True), R) * inv_count
            yc = y - jnp.dot(mean, RT)                 # centered, (N, O*D)
            var = jnp.dot(jnp.sum(yc * yc, axis=0, keepdims=True), R) * inv_count
            y = yc * jnp.dot(jax.lax.rsqrt(var + BN_EPS), RT)
        else:
            y = y + refs[idx][...]; idx += 1           # bias broadcast over rows
        if lm["act"] == "leaky":
            y = jnp.where(y > 0, y, LEAKY_SLOPE * y)
        else:  # sigmoid (exact; tiny, not worth approx reciprocal error)
            y = 1.0 / (1.0 + jnp.exp(-y))
        a = y
    # Final layer's channel dim was lane-padded to 128; keep only the real one.
    out_ref[...] = a[:, 0:out_ref.shape[1]].astype(out_ref.dtype)


# --------------------------- parameter preparation ----------------------------
def _conv_as_matmul(w_oihw, H, W, stride, pad, in_layout):
    """Lower a Conv2d to a dense matrix M so that  y_flat = x_flat @ M.

    x_flat columns: in_layout == 'nchw' -> k = c*H*W + h*W + w
                    in_layout == 'nhwc' -> k = (h*W + w)*Cin + c
    y_flat columns: (oh*OW + ow)*Cout + d   (== next layer's 'nhwc' flattening).
    Zero padding is encoded by simply omitting out-of-bounds taps.
    """
    Cout, Cin, KH, KW = w_oihw.shape
    OH = (H + 2 * pad - KH) // stride + 1
    OW = (W + 2 * pad - KW) // stride + 1
    M = np.zeros((H * W * Cin, OH * OW * Cout), np.float32)
    for oh in range(OH):
        for ow in range(OW):
            col0 = (oh * OW + ow) * Cout
            for i in range(KH):
                ih = oh * stride - pad + i
                if not (0 <= ih < H):
                    continue
                for j in range(KW):
                    iw = ow * stride - pad + j
                    if not (0 <= iw < W):
                        continue
                    tap = w_oihw[:, :, i, j].T                     # (Cin, Cout)
                    if in_layout == "nchw":
                        rows = np.arange(Cin) * H * W + ih * W + iw
                        M[rows, col0:col0 + Cout] += tap
                    else:
                        r0 = (ih * W + iw) * Cin
                        M[r0:r0 + Cin, col0:col0 + Cout] += tap
    return M, OH, OW


def build_dnet_params(key, nc, input_size, nf):
    """Replicates DNET.__init__ layer construction; PyTorch-style uniform init."""
    def conv_init(k, cout, cin, kh, kw):
        k1, k2 = jax.random.split(k)
        bound = 1.0 / np.sqrt(cin * kh * kw)
        w = jax.random.uniform(k1, (cout, cin, kh, kw), jnp.float32, -bound, bound)
        b = jax.random.uniform(k2, (cout,), jnp.float32, -bound, bound)
        return w, b

    layers = []
    keys = iter(jax.random.split(key, 32))
    w, b = conv_init(next(keys), nf, nc, 4, 4)
    layers.append(dict(w=w, b=b, bn=False, act="leaky", s=2, p=1))
    n = input_size / 2
    feature = nf
    while n > 1:
        w, b = conv_init(next(keys), feature * 2, feature, 4, 4)
        layers.append(dict(w=w, b=b, bn=True, act="leaky", s=2, p=1))
        feature *= 2
        n = n / 2
    w, b = conv_init(next(keys), 1, feature, 1, 1)
    layers.append(dict(w=w, b=b, bn=False, act="sigmoid", s=1, p=0))
    return layers


def prepare_fused(params, batch, nc, input_size):
    """Hoist all relayout / im2col lowering out of the forward pass."""
    H = W = input_size
    layout = "nchw"                       # raw NCHW input is flattened row-major
    flat_args, meta = [], []
    for li, layer in enumerate(params):
        w = np.asarray(layer["w"], np.float32)
        b = np.asarray(layer["b"], np.float32)
        cout = w.shape[0]
        is_last = li == len(params) - 1
        mat, OH, OW = _conv_as_matmul(w, H, W, layer["s"], layer["p"], layout)
        bias_cols = np.tile(b, OH * OW)[None, :]              # (1, OH*OW*Cout)
        if is_last:
            # Final 1x1 conv: pad Cout 1 -> 128 so the last matmul output and
            # bias row are lane-dense; kernel slices column 0 before the store.
            assert OH * OW == 1
            padc = 128 - cout
            mat = np.pad(mat, ((0, 0), (0, padc)))
            bias_cols = np.pad(bias_cols, ((0, 0), (0, padc)))
        flat_args.append(jnp.asarray(mat, jnp.bfloat16))
        if layer["bn"]:
            R = np.tile(np.eye(cout, dtype=np.float32), (OH * OW, 1))  # (O*D, D)
            flat_args.append(jnp.asarray(R, jnp.float32))
            flat_args.append(jnp.asarray(np.ascontiguousarray(R.T), jnp.float32))
            meta.append(dict(bn=True, act=layer["act"],
                             inv_count=1.0 / float(batch * OH * OW)))
        else:
            flat_args.append(jnp.asarray(bias_cols, jnp.float32))
            meta.append(dict(bn=False, act=layer["act"], inv_count=None))
        H, W = OH, OW
        layout = "nhwc"

    in_bytes = (sum(int(np.prod(a.shape)) * a.dtype.itemsize for a in flat_args)
                + batch * nc * input_size * input_size * 4)
    # TODO(synk): per-layer M-tiled kernels for configs too large to fuse in VMEM.
    assert in_bytes <= _FUSED_VMEM_BUDGET, (
        f"fused DNET path needs VMEM-resident operands; got {in_bytes} bytes")
    return flat_args, tuple(meta)


# ------------------------------- forward pass ----------------------------------
def dnet_forward(flat_args, meta, x_nchw, batch):
    N = x_nchw.shape[0]
    x_flat = x_nchw.reshape(N, -1).astype(jnp.float32)   # pure reshape, no copy
    kernel = functools.partial(_dnet_fused_kernel, meta=meta)
    vmem_spec = pl.BlockSpec(memory_space=pltpu.MemorySpace.VMEM)
    out = pl.pallas_call(
        kernel,
        out_shape=jax.ShapeDtypeStruct((N, 1), jnp.float32),
        in_specs=[vmem_spec] * (1 + len(flat_args)),
        out_specs=vmem_spec,
        compiler_params=pltpu.CompilerParams(vmem_limit_bytes=32 * 1024 * 1024),
    )(x_flat, *flat_args)
    return out.reshape(batch)                            # == output.view(self.batch)


# ---------------------------- pure-JAX reference --------------------------------
def ref_forward(params, x_nchw, batch):
    x = jnp.transpose(x_nchw, (0, 2, 3, 1)).astype(jnp.float32)
    for layer in params:
        w_hwio = jnp.transpose(layer["w"], (2, 3, 1, 0))
        s, p = layer["s"], layer["p"]
        y = jax.lax.conv_general_dilated(
            x, w_hwio, (s, s), ((p, p), (p, p)),
            dimension_numbers=("NHWC", "HWIO", "NHWC"),
            preferred_element_type=jnp.float32)
        y = y + layer["b"].reshape(1, 1, 1, -1)
        if layer["bn"]:
            mean = jnp.mean(y, axis=(0, 1, 2), keepdims=True)
            var = jnp.mean(jnp.square(y - mean), axis=(0, 1, 2), keepdims=True)
            y = (y - mean) * jax.lax.rsqrt(var + BN_EPS)
        if layer["act"] == "leaky":
            y = jnp.where(y > 0, y, LEAKY_SLOPE * y)
        else:
            y = jax.nn.sigmoid(y)
        x = y
    return x.reshape(batch)


if __name__ == "__main__":
    batch, nc, input_size, nf = 4, 3, 16, 8       # 16 -> 8 -> 4 -> 2 -> 1 spatial
    key = jax.random.PRNGKey(0)
    kx, kp = jax.random.split(key)
    x = jax.random.normal(kx, (batch, nc, input_size, input_size), jnp.float32)
    raw_params = build_dnet_params(kp, nc, input_size, nf)
    flat_args, meta = prepare_fused(raw_params, batch, nc, input_size)

    fwd = jax.jit(lambda xx: dnet_forward(flat_args, meta, xx, batch))
    out = jax.block_until_ready(fwd(x))
    ref = jax.block_until_ready(ref_forward(raw_params, x, batch))

    assert out.shape == (batch,)
    # Tolerance loosened vs. the f32 reference: MXU operands are bf16 (f32 accum).
    np.testing.assert_allclose(np.asarray(out), np.asarray(ref),
                               rtol=2e-2, atol=2e-2)
    print("KERNEL_OK")
</pallas_src>

<mosaic_0001>
module attributes {stable_mosaic.version = 11 : i64} {
  func.func @_dnet_fused_kernel(%arg0: memref<4x768xf32, #tpu.memory_space<vmem>>, %arg1: memref<768x512xbf16, #tpu.memory_space<vmem>>, %arg2: memref<1x512xf32, #tpu.memory_space<vmem>>, %arg3: memref<512x256xbf16, #tpu.memory_space<vmem>>, %arg4: memref<256x16xf32, #tpu.memory_space<vmem>>, %arg5: memref<16x256xf32, #tpu.memory_space<vmem>>, %arg6: memref<256x128xbf16, #tpu.memory_space<vmem>>, %arg7: memref<128x32xf32, #tpu.memory_space<vmem>>, %arg8: memref<32x128xf32, #tpu.memory_space<vmem>>, %arg9: memref<128x64xbf16, #tpu.memory_space<vmem>>, %arg10: memref<64x64xf32, #tpu.memory_space<vmem>>, %arg11: memref<64x64xf32, #tpu.memory_space<vmem>>, %arg12: memref<64x128xbf16, #tpu.memory_space<vmem>>, %arg13: memref<1x128xf32, #tpu.memory_space<vmem>>, %arg14: memref<4x1xf32, #tpu.memory_space<vmem>>) attributes {dimension_semantics = [], scalar_prefetch = 0 : i64, scratch_operands = 0 : i64, tpu.core_type = #tpu.core_type<tc>} {
    %c0 = arith.constant 0 : index
    %c0_0 = arith.constant 0 : index
    %0 = vector.load %arg0[%c0, %c0_0] : memref<4x768xf32, #tpu.memory_space<vmem>>, vector<4x768xf32>
    %c0_1 = arith.constant 0 : index
    %c0_2 = arith.constant 0 : index
    %1 = vector.load %arg1[%c0_1, %c0_2] : memref<768x512xbf16, #tpu.memory_space<vmem>>, vector<768x512xbf16>
    %2 = arith.truncf %0 : vector<4x768xf32> to vector<4x768xbf16>
    %cst = arith.constant dense<0.000000e+00> : vector<4x512xf32>
    %3 = tpu.matmul %2, %1, %cst {dimension_numbers = #tpu.dot_dimension_numbers<[1], [0], [0], [1], [0, 0, 1, 1], [], []>} : vector<4x768xbf16>, vector<768x512xbf16>, vector<4x512xf32> -> vector<4x512xf32>
    %c0_3 = arith.constant 0 : index
    %c0_4 = arith.constant 0 : index
    %4 = vector.load %arg2[%c0_3, %c0_4] : memref<1x512xf32, #tpu.memory_space<vmem>>, vector<1x512xf32>
    %5 = vector.broadcast %4 : vector<1x512xf32> to vector<4x512xf32>
    %6 = arith.addf %3, %5 : vector<4x512xf32>
    %cst_5 = arith.constant 0.000000e+00 : f32
    %7 = vector.broadcast %cst_5 : f32 to vector<4x512xf32>
    %8 = arith.cmpf ogt, %6, %7 : vector<4x512xf32>
    %cst_6 = arith.constant 2.000000e-01 : f32
    %9 = vector.broadcast %cst_6 : f32 to vector<4x512xf32>
    %10 = arith.mulf %9, %6 : vector<4x512xf32>
    %11 = arith.select %8, %6, %10 : vector<4x512xi1>, vector<4x512xf32>
    %c0_7 = arith.constant 0 : index
    %c0_8 = arith.constant 0 : index
    %12 = vector.load %arg3[%c0_7, %c0_8] : memref<512x256xbf16, #tpu.memory_space<vmem>>, vector<512x256xbf16>
    %13 = arith.truncf %11 : vector<4x512xf32> to vector<4x512xbf16>
    %cst_9 = arith.constant dense<0.000000e+00> : vector<4x256xf32>
    %14 = tpu.matmul %13, %12, %cst_9 {dimension_numbers = #tpu.dot_dimension_numbers<[1], [0], [0], [1], [0, 0, 1, 1], [], []>} : vector<4x512xbf16>, vector<512x256xbf16>, vector<4x256xf32> -> vector<4x256xf32>
    %c0_10 = arith.constant 0 : index
    %c0_11 = arith.constant 0 : index
    %15 = vector.load %arg4[%c0_10, %c0_11] : memref<256x16xf32, #tpu.memory_space<vmem>>, vector<256x16xf32>
    %c0_12 = arith.constant 0 : index
    %c0_13 = arith.constant 0 : index
    %16 = vector.load %arg5[%c0_12, %c0_13] : memref<16x256xf32, #tpu.memory_space<vmem>>, vector<16x256xf32>
    %cst_14 = arith.constant dense<0.000000e+00> : vector<256xf32>
    %17 = vector.multi_reduction <add>, %14, %cst_14 [0] : vector<4x256xf32> to vector<256xf32>
    %18 = vector.shape_cast %17 : vector<256xf32> to vector<1x256xf32>
    %cst_15 = arith.constant dense<0.000000e+00> : vector<1x16xf32>
    %19 = tpu.matmul %18, %15, %cst_15 {dimension_numbers = #tpu.dot_dimension_numbers<[1], [0], [0], [1], [0, 0, 1, 1], [], []>} : vector<1x256xf32>, vector<256x16xf32>, vector<1x16xf32> -> vector<1x16xf32>
    %cst_16 = arith.constant 1.562500e-02 : f32
    %20 = vector.broadcast %cst_16 : f32 to vector<1x16xf32>
    %21 = arith.mulf %19, %20 : vector<1x16xf32>
    %cst_17 = arith.constant dense<0.000000e+00> : vector<1x256xf32>
    %22 = tpu.matmul %21, %16, %cst_17 {dimension_numbers = #tpu.dot_dimension_numbers<[1], [0], [0], [1], [0, 0, 1, 1], [], []>} : vector<1x16xf32>, vector<16x256xf32>, vector<1x256xf32> -> vector<1x256xf32>
    %23 = vector.broadcast %22 : vector<1x256xf32> to vector<4x256xf32>
    %24 = arith.subf %14, %23 : vector<4x256xf32>
    %25 = arith.mulf %24, %24 : vector<4x256xf32>
    %cst_18 = arith.constant dense<0.000000e+00> : vector<256xf32>
    %26 = vector.multi_reduction <add>, %25, %cst_18 [0] : vector<4x256xf32> to vector<256xf32>
    %27 = vector.shape_cast %26 : vector<256xf32> to vector<1x256xf32>
    %cst_19 = arith.constant dense<0.000000e+00> : vector<1x16xf32>
    %28 = tpu.matmul %27, %15, %cst_19 {dimension_numbers = #tpu.dot_dimension_numbers<[1], [0], [0], [1], [0, 0, 1, 1], [], []>} : vector<1x256xf32>, vector<256x16xf32>, vector<1x16xf32> -> vector<1x16xf32>
    %cst_20 = arith.constant 1.562500e-02 : f32
    %29 = vector.broadcast %cst_20 : f32 to vector<1x16xf32>
    %30 = arith.mulf %28, %29 : vector<1x16xf32>
    %cst_21 = arith.constant 9.99999974E-6 : f32
    %31 = vector.broadcast %cst_21 : f32 to vector<1x16xf32>
    %32 = arith.addf %30, %31 : vector<1x16xf32>
    %33 = math.rsqrt %32 : vector<1x16xf32>
    %cst_22 = arith.constant dense<0.000000e+00> : vector<1x256xf32>
    %34 = tpu.matmul %33, %16, %cst_22 {dimension_numbers = #tpu.dot_dimension_numbers<[1], [0], [0], [1], [0, 0, 1, 1], [], []>} : vector<1x16xf32>, vector<16x256xf32>, vector<1x256xf32> -> vector<1x256xf32>
    %35 = vector.broadcast %34 : vector<1x256xf32> to vector<4x256xf32>
    %36 = arith.mulf %24, %35 : vector<4x256xf32>
    %cst_23 = arith.constant 0.000000e+00 : f32
    %37 = vector.broadcast %cst_23 : f32 to vector<4x256xf32>
    %38 = arith.cmpf ogt, %36, %37 : vector<4x256xf32>
    %cst_24 = arith.constant 2.000000e-01 : f32
    %39 = vector.broadcast %cst_24 : f32 to vector<4x256xf32>
    %40 = arith.mulf %39, %36 : vector<4x256xf32>
    %41 = arith.select %38, %36, %40 : vector<4x256xi1>, vector<4x256xf32>
    %c0_25 = arith.constant 0 : index
    %c0_26 = arith.constant 0 : index
    %42 = vector.load %arg6[%c0_25, %c0_26] : memref<256x128xbf16, #tpu.memory_space<vmem>>, vector<256x128xbf16>
    %43 = arith.truncf %41 : vector<4x256xf32> to vector<4x256xbf16>
    %cst_27 = arith.constant dense<0.000000e+00> : vector<4x128xf32>
    %44 = tpu.matmul %43, %42, %cst_27 {dimension_numbers = #tpu.dot_dimension_numbers<[1], [0], [0], [1], [0, 0, 1, 1], [], []>} : vector<4x256xbf16>, vector<256x128xbf16>, vector<4x128xf32> -> vector<4x128xf32>
    %c0_28 = arith.constant 0 : index
    %c0_29 = arith.constant 0 : index
    %45 = vector.load %arg7[%c0_28, %c0_29] : memref<128x32xf32, #tpu.memory_space<vmem>>, vector<128x32xf32>
    %c0_30 = arith.constant 0 : index
    %c0_31 = arith.constant 0 : index
    %46 = vector.load %arg8[%c0_30, %c0_31] : memref<32x128xf32, #tpu.memory_space<vmem>>, vector<32x128xf32>
    %cst_32 = arith.constant dense<0.000000e+00> : vector<128xf32>
    %47 = vector.multi_reduction <add>, %44, %cst_32 [0] : vector<4x128xf32> to vector<128xf32>
    %48 = vector.shape_cast %47 : vector<128xf32> to vector<1x128xf32>
    %cst_33 = arith.constant dense<0.000000e+00> : vector<1x32xf32>
    %49 = tpu.matmul %48, %45, %cst_33 {dimension_numbers = #tpu.dot_dimension_numbers<[1], [0], [0], [1], [0, 0, 1, 1], [], []>} : vector<1x128xf32>, vector<128x32xf32>, vector<1x32xf32> -> vector<1x32xf32>
    %cst_34 = arith.constant 6.250000e-02 : f32
    %50 = vector.broadcast %cst_34 : f32 to vector<1x32xf32>
    %51 = arith.mulf %49, %50 : vector<1x32xf32>
    %cst_35 = arith.constant dense<0.000000e+00> : vector<1x128xf32>
    %52 = tpu.matmul %51, %46, %cst_35 {dimension_numbers = #tpu.dot_dimension_numbers<[1], [0], [0], [1], [0, 0, 1, 1], [], []>} : vector<1x32xf32>, vector<32x128xf32>, vector<1x128xf32> -> vector<1x128xf32>
    %53 = vector.broadcast %52 : vector<1x128xf32> to vector<4x128xf32>
    %54 = arith.subf %44, %53 : vector<4x128xf32>
    %55 = arith.mulf %54, %54 : vector<4x128xf32>
    %cst_36 = arith.constant dense<0.000000e+00> : vector<128xf32>
    %56 = vector.multi_reduction <add>, %55, %cst_36 [0] : vector<4x128xf32> to vector<128xf32>
    %57 = vector.shape_cast %56 : vector<128xf32> to vector<1x128xf32>
    %cst_37 = arith.constant dense<0.000000e+00> : vector<1x32xf32>
    %58 = tpu.matmul %57, %45, %cst_37 {dimension_numbers = #tpu.dot_dimension_numbers<[1], [0], [0], [1], [0, 0, 1, 1], [], []>} : vector<1x128xf32>, vector<128x32xf32>, vector<1x32xf32> -> vector<1x32xf32>
    %cst_38 = arith.constant 6.250000e-02 : f32
    %59 = vector.broadcast %cst_38 : f32 to vector<1x32xf32>
    %60 = arith.mulf %58, %59 : vector<1x32xf32>
    %cst_39 = arith.constant 9.99999974E-6 : f32
    %61 = vector.broadcast %cst_39 : f32 to vector<1x32xf32>
    %62 = arith.addf %60, %61 : vector<1x32xf32>
    %63 = math.rsqrt %62 : vector<1x32xf32>
    %cst_40 = arith.constant dense<0.000000e+00> : vector<1x128xf32>
    %64 = tpu.matmul %63, %46, %cst_40 {dimension_numbers = #tpu.dot_dimension_numbers<[1], [0], [0], [1], [0, 0, 1, 1], [], []>} : vector<1x32xf32>, vector<32x128xf32>, vector<1x128xf32> -> vector<1x128xf32>
    %65 = vector.broadcast %64 : vector<1x128xf32> to vector<4x128xf32>
    %66 = arith.mulf %54, %65 : vector<4x128xf32>
    %cst_41 = arith.constant 0.000000e+00 : f32
    %67 = vector.broadcast %cst_41 : f32 to vector<4x128xf32>
    %68 = arith.cmpf ogt, %66, %67 : vector<4x128xf32>
    %cst_42 = arith.constant 2.000000e-01 : f32
    %69 = vector.broadcast %cst_42 : f32 to vector<4x128xf32>
    %70 = arith.mulf %69, %66 : vector<4x128xf32>
    %71 = arith.select %68, %66, %70 : vector<4x128xi1>, vector<4x128xf32>
    %c0_43 = arith.constant 0 : index
    %c0_44 = arith.constant 0 : index
    %72 = vector.load %arg9[%c0_43, %c0_44] : memref<128x64xbf16, #tpu.memory_space<vmem>>, vector<128x64xbf16>
    %73 = arith.truncf %71 : vector<4x128xf32> to vector<4x128xbf16>
    %cst_45 = arith.constant dense<0.000000e+00> : vector<4x64xf32>
    %74 = tpu.matmul %73, %72, %cst_45 {dimension_numbers = #tpu.dot_dimension_numbers<[1], [0], [0], [1], [0, 0, 1, 1], [], []>} : vector<4x128xbf16>, vector<128x64xbf16>, vector<4x64xf32> -> vector<4x64xf32>
    %c0_46 = arith.constant 0 : index
    %c0_47 = arith.constant 0 : index
    %75 = vector.load %arg10[%c0_46, %c0_47] : memref<64x64xf32, #tpu.memory_space<vmem>>, vector<64x64xf32>
    %c0_48 = arith.constant 0 : index
    %c0_49 = arith.constant 0 : index
    %76 = vector.load %arg11[%c0_48, %c0_49] : memref<64x64xf32, #tpu.memory_space<vmem>>, vector<64x64xf32>
    %cst_50 = arith.constant dense<0.000000e+00> : vector<64xf32>
    %77 = vector.multi_reduction <add>, %74, %cst_50 [0] : vector<4x64xf32> to vector<64xf32>
    %78 = vector.shape_cast %77 : vector<64xf32> to vector<1x64xf32>
    %cst_51 = arith.constant dense<0.000000e+00> : vector<1x64xf32>
    %79 = tpu.matmul %78, %75, %cst_51 {dimension_numbers = #tpu.dot_dimension_numbers<[1], [0], [0], [1], [0, 0, 1, 1], [], []>} : vector<1x64xf32>, vector<64x64xf32>, vector<1x64xf32> -> vector<1x64xf32>
    %cst_52 = arith.constant 2.500000e-01 : f32
    %80 = vector.broadcast %cst_52 : f32 to vector<1x64xf32>
    %81 = arith.mulf %79, %80 : vector<1x64xf32>
    %cst_53 = arith.constant dense<0.000000e+00> : vector<1x64xf32>
    %82 = tpu.matmul %81, %76, %cst_53 {dimension_numbers = #tpu.dot_dimension_numbers<[1], [0], [0], [1], [0, 0, 1, 1], [], []>} : vector<1x64xf32>, vector<64x64xf32>, vector<1x64xf32> -> vector<1x64xf32>
    %83 = vector.broadcast %82 : vector<1x64xf32> to vector<4x64xf32>
    %84 = arith.subf %74, %83 : vector<4x64xf32>
    %85 = arith.mulf %84, %84 : vector<4x64xf32>
    %cst_54 = arith.constant dense<0.000000e+00> : vector<64xf32>
    %86 = vector.multi_reduction <add>, %85, %cst_54 [0] : vector<4x64xf32> to vector<64xf32>
    %87 = vector.shape_cast %86 : vector<64xf32> to vector<1x64xf32>
    %cst_55 = arith.constant dense<0.000000e+00> : vector<1x64xf32>
    %88 = tpu.matmul %87, %75, %cst_55 {dimension_numbers = #tpu.dot_dimension_numbers<[1], [0], [0], [1], [0, 0, 1, 1], [], []>} : vector<1x64xf32>, vector<64x64xf32>, vector<1x64xf32> -> vector<1x64xf32>
    %cst_56 = arith.constant 2.500000e-01 : f32
    %89 = vector.broadcast %cst_56 : f32 to vector<1x64xf32>
    %90 = arith.mulf %88, %89 : vector<1x64xf32>
    %cst_57 = arith.constant 9.99999974E-6 : f32
    %91 = vector.broadcast %cst_57 : f32 to vector<1x64xf32>
    %92 = arith.addf %90, %91 : vector<1x64xf32>
    %93 = math.rsqrt %92 : vector<1x64xf32>
    %cst_58 = arith.constant dense<0.000000e+00> : vector<1x64xf32>
    %94 = tpu.matmul %93, %76, %cst_58 {dimension_numbers = #tpu.dot_dimension_numbers<[1], [0], [0], [1], [0, 0, 1, 1], [], []>} : vector<1x64xf32>, vector<64x64xf32>, vector<1x64xf32> -> vector<1x64xf32>
    %95 = vector.broadcast %94 : vector<1x64xf32> to vector<4x64xf32>
    %96 = arith.mulf %84, %95 : vector<4x64xf32>
    %cst_59 = arith.constant 0.000000e+00 : f32
    %97 = vector.broadcast %cst_59 : f32 to vector<4x64xf32>
    %98 = arith.cmpf ogt, %96, %97 : vector<4x64xf32>
    %cst_60 = arith.constant 2.000000e-01 : f32
    %99 = vector.broadcast %cst_60 : f32 to vector<4x64xf32>
    %100 = arith.mulf %99, %96 : vector<4x64xf32>
    %101 = arith.select %98, %96, %100 : vector<4x64xi1>, vector<4x64xf32>
    %c0_61 = arith.constant 0 : index
    %c0_62 = arith.constant 0 : index
    %102 = vector.load %arg12[%c0_61, %c0_62] : memref<64x128xbf16, #tpu.memory_space<vmem>>, vector<64x128xbf16>
    %103 = arith.truncf %101 : vector<4x64xf32> to vector<4x64xbf16>
    %cst_63 = arith.constant dense<0.000000e+00> : vector<4x128xf32>
    %104 = tpu.matmul %103, %102, %cst_63 {dimension_numbers = #tpu.dot_dimension_numbers<[1], [0], [0], [1], [0, 0, 1, 1], [], []>} : vector<4x64xbf16>, vector<64x128xbf16>, vector<4x128xf32> -> vector<4x128xf32>
    %c0_64 = arith.constant 0 : index
    %c0_65 = arith.constant 0 : index
    %105 = vector.load %arg13[%c0_64, %c0_65] : memref<1x128xf32, #tpu.memory_space<vmem>>, vector<1x128xf32>
    %106 = vector.broadcast %105 : vector<1x128xf32> to vector<4x128xf32>
    %107 = arith.addf %104, %106 : vector<4x128xf32>
    %cst_66 = arith.constant 0.000000e+00 : f32
    %108 = vector.broadcast %cst_66 : f32 to vector<4x128xf32>
    %109 = arith.subf %108, %107 : vector<4x128xf32>
    %110 = math.exp %109 : vector<4x128xf32>
    %cst_67 = arith.constant 1.000000e+00 : f32
    %111 = vector.broadcast %cst_67 : f32 to vector<4x128xf32>
    %112 = arith.addf %111, %110 : vector<4x128xf32>
    %cst_68 = arith.constant 1.000000e+00 : f32
    %113 = vector.broadcast %cst_68 : f32 to vector<4x128xf32>
    %114 = arith.divf %113, %112 : vector<4x128xf32>
    %115 = vector.extract_strided_slice %114 {offsets = [0, 0], sizes = [4, 1], strides = [1, 1]} : vector<4x128xf32> to vector<4x1xf32>
    %c0_69 = arith.constant 0 : index
    %c0_70 = arith.constant 0 : index
    %116 = vector.load %arg14[%c0_69, %c0_70] : memref<4x1xf32, #tpu.memory_space<vmem>>, vector<4x1xf32>
    tpu.vector_store %arg14[%c0_69, %c0_70], %115 {strides = array<i32>} : memref<4x1xf32, #tpu.memory_space<vmem>>, vector<4x1xf32>,
    return
  }
}

</mosaic_0001>

<bundles_post_ra>
// kernel: _lambda_.1
= control target key start
LH: loop header
LB: loop body
LE: loop exit
PB: predicated region body
PF: predicated region fallthrough
CT: control target
= control target key end

     0   :  { %vm2004_vm4 = vcmask 1043456   ;;  %vm2090_vm5 = vcmask 130048   ;;  %vm4719_vm8 = vmmov 0   ;;  %vm2622_vm9 = vcmask 261120   ;;  %s6068_s1 = inlined_call_operand.vmem [shape: bf16[768,512], index: 1, kind: input, shape index: {}]   ;;  %s6069_s0 = inlined_call_operand.vmem [shape: f32[4,768], index: 0, kind: input, shape index: {}]   ;;  %s6070_s3 = inlined_call_operand.vmem [shape: bf16[512,256], index: 3, kind: input, shape index: {}]   ;;  %s6071_s4 = inlined_call_operand.vmem [shape: f32[256,16], index: 4, kind: input, shape index: {}]   ;;  %s6072_s2 = inlined_call_operand.vmem [shape: f32[1,512], index: 2, kind: input, shape index: {}]   ;;  %s6073_s5 = inlined_call_operand.vmem [shape: f32[16,256], index: 5, kind: input, shape index: {}]   ;;  %s6074_s6 = inlined_call_operand.vmem [shape: bf16[256,128], index: 6, kind: input, shape index: {}]   ;;  %s6075_s7 = inlined_call_operand.vmem [shape: f32[128,32], index: 7, kind: input, shape index: {}]   ;;  %s6076_s8 = inlined_call_operand.vmem [shape: f32[32,128], index: 8, kind: input, shape index: {}]   ;;  %s6077_s9 = inlined_call_operand.vmem [shape: bf16[128,64], index: 9, kind: input, shape index: {}]   ;;  %s6078_s10 = inlined_call_operand.vmem [shape: f32[64,64], index: 10, kind: input, shape index: {}, may-alias: {10,11}]   ;;  %s6079_s11 = inlined_call_operand.vmem [shape: f32[64,64], index: 11, kind: input, shape index: {}, may-alias: {10,11}]   ;;  %s6080_s12 = inlined_call_operand.vmem [shape: bf16[64,128], index: 12, kind: input, shape index: {}]   ;;  %s6081_s13 = inlined_call_operand.vmem [shape: f32[1,128], index: 13, kind: input, shape index: {}]   ;;  %s6082_s14 = inlined_call_operand.vmem [shape: f32[4,1], index: 14, kind: output, shape index: {}]  }
   0x1   :  { %v4292_v0 = vld [vmem:[%s6068_s1 + $0x4] ss:$16 sps:$4 sm:$0xff]   ;;  %v4294_v1 = vld [vmem:[%s6068_s1 + $0xc] ss:$16 sps:$4 sm:$0xff]   ;;  %v4296_v2 = vld [vmem:[%s6068_s1] ss:$16 sps:$4 sm:$0xff]  }
   0x2   :  { %1240 = vmatprep.subr.bf16.mxu0 %v4292_v0  ;;  %v4297_v3 = vld [vmem:[%s6068_s1 + $0x8] ss:$16 sps:$4 sm:$0xff]   ;;  %1363 = vmatprep.subr.bf16.mxu1 %v4294_v1  ;;  %v4298_v4 = vld [vmem:[%s6068_s1 + $0x24] ss:$16 sps:$4 sm:$0xff]   ;;  %v4300_v5 = vld [vmem:[%s6068_s1 + $0x2c] ss:$16 sps:$4 sm:$0xff]  }
   0x3   :  { %1241 = vmatpush1.bf16.msra.mxu0 %v4296_v2  ;;  %1364 = vmatpush1.bf16.msra.mxu1 %v4297_v3  ;;  %v4302_v6 = vld [vmem:[%s6068_s1 + $0x20] ss:$16 sps:$4 sm:$0xff]   ;;  %v4303_v7 = vld [vmem:[%s6068_s1 + $0x28] ss:$16 sps:$4 sm:$0xff]   ;;  %v4304_v8 = vld [vmem:[%s6068_s1 + $0x44] ss:$16 sps:$4 sm:$0xff]  }
   0x4   :  { %1242 = vmatprep.subr.bf16.mxu0 %v4298_v4  ;;  %1365 = vmatprep.subr.bf16.mxu1 %v4300_v5  ;;  %v4306_v9 = vld [vmem:[%s6068_s1 + $0x4c] ss:$16 sps:$4 sm:$0xff]   ;;  %v4308_v10 = vld [vmem:[%s6068_s1 + $0x40] ss:$16 sps:$4 sm:$0xff]   ;;  %v4309_v11 = vld [vmem:[%s6068_s1 + $0x48] ss:$16 sps:$4 sm:$0xff]  }
   0x5   :  { %v4310_v12 = vld [vmem:[%s6068_s1 + $0x64] ss:$16 sps:$4 sm:$0xff]   ;;  %v4312_v13 = vld [vmem:[%s6068_s1 + $0x6c] ss:$16 sps:$4 sm:$0xff]   ;;  %v4314_v14 = vld [vmem:[%s6068_s1 + $0x60] ss:$16 sps:$4 sm:$0xff]  }
   0x6   :  { %v4315_v15 = vld [vmem:[%s6068_s1 + $0x68] ss:$16 sps:$4 sm:$0xff]   ;;  %v4316_v16 = vld [vmem:[%s6068_s1 + $0x84] ss:$16 sps:$4 sm:$0xff]   ;;  %v4318_v17 = vld [vmem:[%s6068_s1 + $0x8c] ss:$16 sps:$4 sm:$0xff]  }
   0x7   :  { %1243 = vmatpush1.bf16.msra.mxu0 %v4302_v6  ;;  %1366 = vmatpush1.bf16.msra.mxu1 %v4303_v7  ;;  %v4320_v18 = vld [vmem:[%s6068_s1 + $0x80] ss:$16 sps:$4 sm:$0xff]   ;;  %v4321_v19 = vld [vmem:[%s6068_s1 + $0x88] ss:$16 sps:$4 sm:$0xff]   ;;  %v4322_v20 = vld [vmem:[%s6068_s1 + $0xa4] ss:$16 sps:$4 sm:$0xff]  }
   0x8   :  { %1244 = vmatprep.subr.bf16.mxu0 %v4304_v8  ;;  %1367 = vmatprep.subr.bf16.mxu1 %v4306_v9  ;;  %v4324_v21 = vld [vmem:[%s6068_s1 + $0xac] ss:$16 sps:$4 sm:$0xff]   ;;  %v4326_v22 = vld [vmem:[%s6068_s1 + $0xa0] ss:$16 sps:$4 sm:$0xff]   ;;  %v4327_v23 = vld [vmem:[%s6068_s1 + $0xa8] ss:$16 sps:$4 sm:$0xff]  }
   0x9   :  { %v4328_v24 = vld [vmem:[%s6068_s1 + $0xc4] ss:$16 sps:$4 sm:$0xff]   ;;  %v4330_v25 = vld [vmem:[%s6068_s1 + $0xcc] ss:$16 sps:$4 sm:$0xff]   ;;  %v4332_v26 = vld [vmem:[%s6068_s1 + $0xc0] ss:$16 sps:$4 sm:$0xff]  }
   0xa   :  { %v4333_v27 = vld [vmem:[%s6068_s1 + $0xc8] ss:$16 sps:$4 sm:$0xff]   ;;  %v4334_v28 = vld [vmem:[%s6068_s1 + $0xe4] ss:$16 sps:$4 sm:$0xff]   ;;  %v4336_v29 = vld [vmem:[%s6068_s1 + $0xec] ss:$16 sps:$4 sm:$0xff]  }
   0xb   :  { %1245 = vmatpush1.bf16.msra.mxu0 %v4308_v10  ;;  %1368 = vmatpush1.bf16.msra.mxu1 %v4309_v11  ;;  %v4338_v30 = vld [vmem:[%s6068_s1 + $0xe0] ss:$16 sps:$4 sm:$0xff]   ;;  %v4339_v31 = vld [vmem:[%s6068_s1 + $0xe8] ss:$16 sps:$4 sm:$0xff]   ;;  %v4340_v32 = vld [vmem:[%s6068_s1 + $0x104] ss:$16 sps:$4 sm:$0xff]  }
   0xc   :  { %1246 = vmatprep.subr.bf16.mxu0 %v4310_v12  ;;  %1369 = vmatprep.subr.bf16.mxu1 %v4312_v13  ;;  %v4342_v33 = vld [vmem:[%s6068_s1 + $0x10c] ss:$16 sps:$4 sm:$0xff]   ;;  %v4344_v34 = vld [vmem:[%s6068_s1 + $0x100] ss:$16 sps:$4 sm:$0xff]   ;;  %v4345_v35 = vld [vmem:[%s6068_s1 + $0x108] ss:$16 sps:$4 sm:$0xff]  }
   0xd   :  { %v4346_v36 = vld [vmem:[%s6068_s1 + $0x124] ss:$16 sps:$4 sm:$0xff]   ;;  %v4348_v37 = vld [vmem:[%s6068_s1 + $0x12c] ss:$16 sps:$4 sm:$0xff]   ;;  %v4350_v38 = vld [vmem:[%s6068_s1 + $0x120] ss:$16 sps:$4 sm:$0xff]  }
   0xe   :  { %v4351_v39 = vld [vmem:[%s6068_s1 + $0x128] ss:$16 sps:$4 sm:$0xff]   ;;  %v4352_v40 = vld [vmem:[%s6068_s1 + $0x144] ss:$16 sps:$4 sm:$0xff]   ;;  %v4354_v41 = vld [vmem:[%s6068_s1 + $0x14c] ss:$16 sps:$4 sm:$0xff]  }
   0xf   :  { %1247 = vmatpush1.bf16.msra.mxu0 %v4314_v14  ;;  %1370 = vmatpush1.bf16.msra.mxu1 %v4315_v15  ;;  %v4356_v42 = vld [vmem:[%s6068_s1 + $0x140] ss:$16 sps:$4 sm:$0xff]   ;;  %v4357_v43 = vld [vmem:[%s6068_s1 + $0x148] ss:$16 sps:$4 sm:$0xff]   ;;  %v4358_v44 = vld [vmem:[%s6068_s1 + $0x164] ss:$16 sps:$4 sm:$0xff]  }
  0x10   :  { %1248 = vmatprep.subr.bf16.mxu0 %v4316_v16  ;;  %1371 = vmatprep.subr.bf16.mxu1 %v4318_v17  ;;  %v4360_v45 = vld [vmem:[%s6068_s1 + $0x16c] ss:$16 sps:$4 sm:$0xff]   ;;  %v48_v46 = vld [vmem:[%s6069_s0] sm:$0xff]  ;;  %v4363_v49 = vld [vmem:[%s6068_s1 + $0x168] ss:$16 sps:$4 sm:$0xff]   ;;  %vm2984_vm11 = vcmask 519168  }
  0x11   :  { %v4362_v47 = vld [vmem:[%s6068_s1 + $0x160] ss:$16 sps:$4 sm:$0xff]   ;;  %v246_v48 = vcombine.high %v48_v46, %v48_v46  ;;  %v4364_v50 = vld [vmem:[%s6068_s1 + $0x184] ss:$16 sps:$4 sm:$0xff]   ;;  %v4366_v51 = vld [vmem:[%s6068_s1 + $0x18c] ss:$16 sps:$4 sm:$0xff]   ;;  %v252_v6 = vpack.c.bf16 %v48_v46, %v48_v46 }
  0x12   :  { %v4368_v53 = vld [vmem:[%s6068_s1 + $0x180] ss:$16 sps:$4 sm:$0xff]   ;;  %v4369_v54 = vld [vmem:[%s6068_s1 + $0x188] ss:$16 sps:$4 sm:$0xff]   ;;  %v4370_v55 = vld [vmem:[%s6068_s1 + $0x1a4] ss:$16 sps:$4 sm:$0xff]  }
  0x13   :  { %1249 = vmatpush1.bf16.msra.mxu0 %v4320_v18  ;;  %1372 = vmatpush1.bf16.msra.mxu1 %v4321_v19  ;;  %v253_v52 = vpack.c.bf16 %v246_v48, %v246_v48  ;;  %v4372_v56 = vld [vmem:[%s6068_s1 + $0x1ac] ss:$16 sps:$4 sm:$0xff]   ;;  %v4374_v57 = vld [vmem:[%s6068_s1 + $0x1a0] ss:$16 sps:$4 sm:$0xff]   ;;  %v4375_v58 = vld [vmem:[%s6068_s1 + $0x1a8] ss:$16 sps:$4 sm:$0xff]  }
  0x14   :  { %1250 = vmatprep.subr.bf16.mxu0 %v4322_v20  ;;  %1373 = vmatprep.subr.bf16.mxu1 %v4324_v21  ;;  %v4376_v59 = vld [vmem:[%s6068_s1 + $0x1c4] ss:$16 sps:$4 sm:$0xff]   ;;  %v4378_v60 = vld [vmem:[%s6068_s1 + $0x1cc] ss:$16 sps:$4 sm:$0xff]   ;;  %v4380_v61 = vld [vmem:[%s6068_s1 + $0x1c0] ss:$16 sps:$4 sm:$0xff]  }
  0x15   :  { %1272 = vmatprep.mubr.bf16.mxu0 %v253_v52  ;;  %1395 = vmatprep.mubr.bf16.mxu1 %v253_v52  ;;  %v4381_v62 = vld [vmem:[%s6068_s1 + $0x1c8] ss:$16 sps:$4 sm:$0xff]   ;;  %v4382_v63 = vld [vmem:[%s6068_s1 + $0x1e4] ss:$16 sps:$4 sm:$0xff]   ;;  %v4384_v0 = vld [vmem:[%s6068_s1 + $0x1ec] ss:$16 sps:$4 sm:$0xff]  }
  0x16   :  { %v4386_v1 = vld [vmem:[%s6068_s1 + $0x1e0] ss:$16 sps:$4 sm:$0xff]   ;;  %v4387_v2 = vld [vmem:[%s6068_s1 + $0x1e8] ss:$16 sps:$4 sm:$0xff]   ;;  %v4391_v3 = vld [vmem:[%s6068_s1 + $0x204] ss:$16 sps:$4 sm:$0xff]  }
  0x17   :  { %1251 = vmatpush1.bf16.msra.mxu0 %v4326_v22  ;;  %1374 = vmatpush1.bf16.msra.mxu1 %v4327_v23  ;;  %v4394_v4 = vld [vmem:[%s6068_s1 + $0x20c] ss:$16 sps:$4 sm:$0xff]   ;;  %v4389_v5 = vld [vmem:[%s6068_s1 + $0x200] ss:$16 sps:$4 sm:$0xff]   ;;  %v4392_v7 = vld [vmem:[%s6068_s1 + $0x208] ss:$16 sps:$4 sm:$0xff]  }
  0x18   :  { %1252 = vmatprep.subr.bf16.mxu0 %v4328_v24  ;;  %1375 = vmatprep.subr.bf16.mxu1 %v4330_v25  ;;  %v4397_v8 = vld [vmem:[%s6068_s1 + $0x224] ss:$16 sps:$4 sm:$0xff]   ;;  %v4400_v9 = vld [vmem:[%s6068_s1 + $0x22c] ss:$16 sps:$4 sm:$0xff]   ;;  %v4395_v10 = vld [vmem:[%s6068_s1 + $0x220] ss:$16 sps:$4 sm:$0xff]  }
  0x19   :  { %v4398_v11 = vld [vmem:[%s6068_s1 + $0x228] ss:$16 sps:$4 sm:$0xff]   ;;  %v4403_v12 = vld [vmem:[%s6068_s1 + $0x244] ss:$16 sps:$4 sm:$0xff]   ;;  %v4406_v13 = vld [vmem:[%s6068_s1 + $0x24c] ss:$16 sps:$4 sm:$0xff]  }
  0x1a   :  { %v4401_v14 = vld [vmem:[%s6068_s1 + $0x240] ss:$16 sps:$4 sm:$0xff]   ;;  %v4404_v15 = vld [vmem:[%s6068_s1 + $0x248] ss:$16 sps:$4 sm:$0xff]   ;;  %v4409_v16 = vld [vmem:[%s6068_s1 + $0x264] ss:$16 sps:$4 sm:$0xff]  }
  0x1b   :  { %1253 = vmatpush1.bf16.msra.mxu0 %v4332_v26  ;;  %1376 = vmatpush1.bf16.msra.mxu1 %v4333_v27  ;;  %v4412_v17 = vld [vmem:[%s6068_s1 + $0x26c] ss:$16 sps:$4 sm:$0xff]   ;;  %v4407_v18 = vld [vmem:[%s6068_s1 + $0x260] ss:$16 sps:$4 sm:$0xff]   ;;  %v4410_v19 = vld [vmem:[%s6068_s1 + $0x268] ss:$16 sps:$4 sm:$0xff]  }
  0x1c   :  { %1254 = vmatprep.subr.bf16.mxu0 %v4334_v28  ;;  %1377 = vmatprep.subr.bf16.mxu1 %v4336_v29  ;;  %v4415_v20 = vld [vmem:[%s6068_s1 + $0x284] ss:$16 sps:$4 sm:$0xff]   ;;  %v4418_v21 = vld [vmem:[%s6068_s1 + $0x28c] ss:$16 sps:$4 sm:$0xff]   ;;  %v4413_v22 = vld [vmem:[%s6068_s1 + $0x280] ss:$16 sps:$4 sm:$0xff]  }
  0x1d   :  { %v4416_v23 = vld [vmem:[%s6068_s1 + $0x288] ss:$16 sps:$4 sm:$0xff]   ;;  %v4421_v24 = vld [vmem:[%s6068_s1 + $0x2a4] ss:$16 sps:$4 sm:$0xff]   ;;  %v4424_v25 = vld [vmem:[%s6068_s1 + $0x2ac] ss:$16 sps:$4 sm:$0xff]  }
  0x1e   :  { %v4419_v26 = vld [vmem:[%s6068_s1 + $0x2a0] ss:$16 sps:$4 sm:$0xff]   ;;  %v4422_v27 = vld [vmem:[%s6068_s1 + $0x2a8] ss:$16 sps:$4 sm:$0xff]   ;;  %v4427_v28 = vld [vmem:[%s6068_s1 + $0x2c4] ss:$16 sps:$4 sm:$0xff]  }
  0x1f   :  { %1255 = vmatpush1.bf16.msra.mxu0 %v4338_v30  ;;  %1378 = vmatpush1.bf16.msra.mxu1 %v4339_v31  ;;  %v4430_v29 = vld [vmem:[%s6068_s1 + $0x2cc] ss:$16 sps:$4 sm:$0xff]   ;;  %v4446_v46 = vld [vmem:[%s6068_s1 + $0x328] ss:$16 sps:$4 sm:$0xff]   ;;  %vm2992_vm12 = vcmask 523264   ;;  %vm3399_vm14 = vcmask 3072  }
  0x20   :  { %1256 = vmatprep.subr.bf16.mxu0 %v4340_v32  ;;  %1379 = vmatprep.subr.bf16.mxu1 %v4342_v33  ;;  %v5071_v30 = vld [vmem:[%s6069_s0 + $0x8] sm:$0xff]  ;;  %v4425_v32 = vld [vmem:[%s6068_s1 + $0x2c0] ss:$16 sps:$4 sm:$0xff]  }
  0x21   :  { %v247_v31 = vcombine.high %v5071_v30, %v5071_v30  ;;  %v4428_v33 = vld [vmem:[%s6068_s1 + $0x2c8] ss:$16 sps:$4 sm:$0xff]   ;;  %v4454_v48 = vld [vmem:[%s6068_s1 + $0x34c] ss:$16 sps:$4 sm:$0xff]  }
  0x22   :  { %v4460_v52 = vld [vmem:[%s6068_s1 + $0x36c] ss:$16 sps:$4 sm:$0xff]  }
  0x23   :  { %1257 = vmatpush1.bf16.msra.mxu0 %v4344_v34  ;;  %1380 = vmatpush1.bf16.msra.mxu1 %v4345_v35  ;;  %v255_v34 = vpack.c.bf16 %v247_v31, %v247_v31  ;;  %v4433_v35 = vld [vmem:[%s6068_s1 + $0x2e4] ss:$16 sps:$4 sm:$0xff]  }
  0x24   :  { %1258 = vmatprep.subr.bf16.mxu0 %v4346_v36  ;;  %1381 = vmatprep.subr.bf16.mxu1 %v4348_v37  ;;  %v4436_v36 = vld [vmem:[%s6068_s1 + $0x2ec] ss:$16 sps:$4 sm:$0xff]   ;;  %v4431_v37 = vld [vmem:[%s6068_s1 + $0x2e0] ss:$16 sps:$4 sm:$0xff]   ;;  %v4518_v31 = vld [vmem:[%s6068_s1 + $0x4a4] ss:$16 sps:$4 sm:$0xff]  }
  0x27   :  { %1259 = vmatpush1.bf16.msra.mxu0 %v4350_v38  ;;  %1382 = vmatpush1.bf16.msra.mxu1 %v4351_v39  ;;  %v4434_v38 = vld [vmem:[%s6068_s1 + $0x2e8] ss:$16 sps:$4 sm:$0xff]   ;;  %v4439_v39 = vld [vmem:[%s6068_s1 + $0x304] ss:$16 sps:$4 sm:$0xff]  }
  0x28   :  { %1260 = vmatprep.subr.bf16.mxu0 %v4352_v40  ;;  %1383 = vmatprep.subr.bf16.mxu1 %v4354_v41  ;;  %v4442_v40 = vld [vmem:[%s6068_s1 + $0x30c] ss:$16 sps:$4 sm:$0xff]   ;;  %v4437_v41 = vld [vmem:[%s6068_s1 + $0x300] ss:$16 sps:$4 sm:$0xff]  }
  0x2b   :  { %1261 = vmatpush1.bf16.msra.mxu0 %v4356_v42  ;;  %1384 = vmatpush1.bf16.msra.mxu1 %v4357_v43  ;;  %v4440_v42 = vld [vmem:[%s6068_s1 + $0x308] ss:$16 sps:$4 sm:$0xff]   ;;  %v4445_v43 = vld [vmem:[%s6068_s1 + $0x324] ss:$16 sps:$4 sm:$0xff]  }
  0x2c   :  { %1262 = vmatprep.subr.bf16.mxu0 %v4358_v44  ;;  %1385 = vmatprep.subr.bf16.mxu1 %v4360_v45  ;;  %v4448_v44 = vld [vmem:[%s6068_s1 + $0x32c] ss:$16 sps:$4 sm:$0xff]   ;;  %v4443_v45 = vld [vmem:[%s6068_s1 + $0x320] ss:$16 sps:$4 sm:$0xff]  }
  0x2f   :  { %1263 = vmatpush1.bf16.msra.mxu0 %v4362_v47  ;;  %1386 = vmatpush1.bf16.msra.mxu1 %v4363_v49  ;;  %v4451_v47 = vld [vmem:[%s6068_s1 + $0x344] ss:$16 sps:$4 sm:$0xff]   ;;  %v4449_v49 = vld [vmem:[%s6068_s1 + $0x340] ss:$16 sps:$4 sm:$0xff]  }
  0x30   :  { %1264 = vmatprep.subr.bf16.mxu0 %v4364_v50  ;;  %1387 = vmatprep.subr.bf16.mxu1 %v4366_v51  ;;  %v4452_v50 = vld [vmem:[%s6068_s1 + $0x348] ss:$16 sps:$4 sm:$0xff]   ;;  %v4457_v51 = vld [vmem:[%s6068_s1 + $0x364] ss:$16 sps:$4 sm:$0xff]  }
  0x33   :  { %1265 = vmatpush1.bf16.msra.mxu0 %v4368_v53  ;;  %1388 = vmatpush1.bf16.msra.mxu1 %v4369_v54  ;;  %v4455_v53 = vld [vmem:[%s6068_s1 + $0x360] ss:$16 sps:$4 sm:$0xff]   ;;  %v4458_v54 = vld [vmem:[%s6068_s1 + $0x368] ss:$16 sps:$4 sm:$0xff]  }
  0x34   :  { %1266 = vmatprep.subr.bf16.mxu0 %v4370_v55  ;;  %1389 = vmatprep.subr.bf16.mxu1 %v4372_v56  ;;  %v4463_v55 = vld [vmem:[%s6068_s1 + $0x384] ss:$16 sps:$4 sm:$0xff]   ;;  %v4466_v56 = vld [vmem:[%s6068_s1 + $0x38c] ss:$16 sps:$4 sm:$0xff]  }
  0x37   :  { %1267 = vmatpush1.bf16.msra.mxu0 %v4374_v57  ;;  %1390 = vmatpush1.bf16.msra.mxu1 %v4375_v58  ;;  %v4461_v57 = vld [vmem:[%s6068_s1 + $0x380] ss:$16 sps:$4 sm:$0xff]   ;;  %v4464_v58 = vld [vmem:[%s6068_s1 + $0x388] ss:$16 sps:$4 sm:$0xff]  }
  0x38   :  { %1268 = vmatprep.subr.bf16.mxu0 %v4376_v59  ;;  %1391 = vmatprep.subr.bf16.mxu1 %v4378_v60  ;;  %v4469_v59 = vld [vmem:[%s6068_s1 + $0x3a4] ss:$16 sps:$4 sm:$0xff]   ;;  %v4472_v60 = vld [vmem:[%s6068_s1 + $0x3ac] ss:$16 sps:$4 sm:$0xff]  }
  0x3b   :  { %1269 = vmatpush1.bf16.msra.mxu0 %v4380_v61  ;;  %1392 = vmatpush1.bf16.msra.mxu1 %v4381_v62  ;;  %v4467_v61 = vld [vmem:[%s6068_s1 + $0x3a0] ss:$16 sps:$4 sm:$0xff]   ;;  %v4470_v62 = vld [vmem:[%s6068_s1 + $0x3a8] ss:$16 sps:$4 sm:$0xff]  }
  0x3c   :  { %1270 = vmatprep.subr.bf16.mxu0 %v4382_v63  ;;  %1393 = vmatprep.subr.bf16.mxu1 %v4384_v0  ;;  %v4475_v63 = vld [vmem:[%s6068_s1 + $0x3c4] ss:$16 sps:$4 sm:$0xff]   ;;  %v4478_v0 = vld [vmem:[%s6068_s1 + $0x3cc] ss:$16 sps:$4 sm:$0xff]  }
  0x3f   :  { %1271 = vmatpush1.bf16.msra.mxu0 %v4386_v1  ;;  %1394 = vmatpush1.bf16.msra.mxu1 %v4387_v2  ;;  %v4473_v1 = vld [vmem:[%s6068_s1 + $0x3c0] ss:$16 sps:$4 sm:$0xff]   ;;  %v4476_v2 = vld [vmem:[%s6068_s1 + $0x3c8] ss:$16 sps:$4 sm:$0xff]  }
  0x40   :  { %1281 = vmatprep.subr.bf16.mxu0 %v4391_v3  ;;  %1404 = vmatprep.subr.bf16.mxu1 %v4394_v4  ;;  %v4481_v3 = vld [vmem:[%s6068_s1 + $0x3e4] ss:$16 sps:$4 sm:$0xff]   ;;  %v4484_v4 = vld [vmem:[%s6068_s1 + $0x3ec] ss:$16 sps:$4 sm:$0xff]  }
  0x42   :  { %1273 = vmatmul.mubr.bf16.vlgmr.msra.gmra.mrb[0].mxu0 %v252_v6  ;;  %1396 = vmatmul.mubr.bf16.vlgmr.msra.gmra.mrb[0].mxu1 %v252_v6  ;;  %v4482_v6 = vld [vmem:[%s6068_s1 + $0x3e8] ss:$16 sps:$4 sm:$0xff]  }
  0x43   :  { %1282 = vmatpush1.bf16.msra.mxu0 %v4389_v5  ;;  %1405 = vmatpush1.bf16.msra.mxu1 %v4392_v7  ;;  %v4479_v5 = vld [vmem:[%s6068_s1 + $0x3e0] ss:$16 sps:$4 sm:$0xff]   ;;  %v4488_v7 = vld [vmem:[%s6068_s1 + $0x404] ss:$16 sps:$4 sm:$0xff]  }
  0x44   :  { %1283 = vmatprep.subr.bf16.mxu0 %v4397_v8  ;;  %1406 = vmatprep.subr.bf16.mxu1 %v4400_v9  ;;  %v4491_v8 = vld [vmem:[%s6068_s1 + $0x40c] ss:$16 sps:$4 sm:$0xff]   ;;  %v254_v9 = vpack.c.bf16 %v5071_v30, %v5071_v30  ;;  %v4513_v30 = vld [vmem:[%s6068_s1 + $0x488] ss:$16 sps:$4 sm:$0xff]  }
  0x45   :  { %1313 = vmatprep.mubr.bf16.mxu0 %v255_v34  ;;  %1436 = vmatprep.mubr.bf16.mxu1 %v255_v34  ;;  %v4519_v34 = vld [vmem:[%s6068_s1 + $0x4a8] ss:$16 sps:$4 sm:$0xff]  }
  0x47   :  { %1284 = vmatpush1.bf16.msra.mxu0 %v4395_v10  ;;  %1407 = vmatpush1.bf16.msra.mxu1 %v4398_v11  ;;  %v4486_v10 = vld [vmem:[%s6068_s1 + $0x400] ss:$16 sps:$4 sm:$0xff]   ;;  %v4489_v11 = vld [vmem:[%s6068_s1 + $0x408] ss:$16 sps:$4 sm:$0xff]  }
  0x48   :  { %1285 = vmatprep.subr.bf16.mxu0 %v4403_v12  ;;  %1408 = vmatprep.subr.bf16.mxu1 %v4406_v13  ;;  %v4494_v12 = vld [vmem:[%s6068_s1 + $0x424] ss:$16 sps:$4 sm:$0xff]  }
  0x49   :  { %v5209_v13 = vld [vmem:[%s6069_s0 + $0x10] sm:$0xff] }
  0x4b   :  { %1286 = vmatpush1.bf16.msra.mxu0 %v4401_v14  ;;  %1409 = vmatpush1.bf16.msra.mxu1 %v4404_v15  ;;  %v4497_v14 = vld [vmem:[%s6068_s1 + $0x42c] ss:$16 sps:$4 sm:$0xff]   ;;  %v248_v15 = vcombine.high %v5209_v13, %v5209_v13 }
  0x4c   :  { %1287 = vmatprep.subr.bf16.mxu0 %v4409_v16  ;;  %1410 = vmatprep.subr.bf16.mxu1 %v4412_v17  ;;  %v4492_v16 = vld [vmem:[%s6068_s1 + $0x420] ss:$16 sps:$4 sm:$0xff]  }
  0x4d   :  { %v257_v17 = vpack.c.bf16 %v248_v15, %v248_v15  ;;  %v4588_v15 = vld [vmem:[%s6070_s3 + $0x14] ss:$8 sps:$4 sm:$0xff]  }
  0x4f   :  { %1288 = vmatpush1.bf16.msra.mxu0 %v4407_v18  ;;  %1411 = vmatpush1.bf16.msra.mxu1 %v4410_v19  ;;  %v4495_v18 = vld [vmem:[%s6068_s1 + $0x428] ss:$16 sps:$4 sm:$0xff]   ;;  %v4500_v19 = vld [vmem:[%s6068_s1 + $0x444] ss:$16 sps:$4 sm:$0xff]  }
  0x50   :  { %1289 = vmatprep.subr.bf16.mxu0 %v4415_v20  ;;  %1412 = vmatprep.subr.bf16.mxu1 %v4418_v21  ;;  %v4503_v20 = vld [vmem:[%s6068_s1 + $0x44c] ss:$16 sps:$4 sm:$0xff]   ;;  %v4498_v21 = vld [vmem:[%s6068_s1 + $0x440] ss:$16 sps:$4 sm:$0xff]  }
  0x53   :  { %1290 = vmatpush1.bf16.msra.mxu0 %v4413_v22  ;;  %1413 = vmatpush1.bf16.msra.mxu1 %v4416_v23  ;;  %v4501_v22 = vld [vmem:[%s6068_s1 + $0x448] ss:$16 sps:$4 sm:$0xff]   ;;  %v4506_v23 = vld [vmem:[%s6068_s1 + $0x464] ss:$16 sps:$4 sm:$0xff]  }
  0x54   :  { %1291 = vmatprep.subr.bf16.mxu0 %v4421_v24  ;;  %1414 = vmatprep.subr.bf16.mxu1 %v4424_v25  ;;  %v4509_v24 = vld [vmem:[%s6068_s1 + $0x46c] ss:$16 sps:$4 sm:$0xff]   ;;  %v4504_v25 = vld [vmem:[%s6068_s1 + $0x460] ss:$16 sps:$4 sm:$0xff]  }
  0x57   :  { %1292 = vmatpush1.bf16.msra.mxu0 %v4419_v26  ;;  %1415 = vmatpush1.bf16.msra.mxu1 %v4422_v27  ;;  %v4507_v26 = vld [vmem:[%s6068_s1 + $0x468] ss:$16 sps:$4 sm:$0xff]   ;;  %v4512_v27 = vld [vmem:[%s6068_s1 + $0x484] ss:$16 sps:$4 sm:$0xff]  }
  0x58   :  { %1293 = vmatprep.subr.bf16.mxu0 %v4427_v28  ;;  %1416 = vmatprep.subr.bf16.mxu1 %v4430_v29  ;;  %v4515_v28 = vld [vmem:[%s6068_s1 + $0x48c] ss:$16 sps:$4 sm:$0xff]   ;;  %v4510_v29 = vld [vmem:[%s6068_s1 + $0x480] ss:$16 sps:$4 sm:$0xff]  }
  0x5b   :  { %1294 = vmatpush1.bf16.msra.mxu0 %v4425_v32  ;;  %1417 = vmatpush1.bf16.msra.mxu1 %v4428_v33  ;;  %v4521_v32 = vld [vmem:[%s6068_s1 + $0x4ac] ss:$16 sps:$4 sm:$0xff]   ;;  %v4516_v33 = vld [vmem:[%s6068_s1 + $0x4a0] ss:$16 sps:$4 sm:$0xff]  }
  0x5c   :  { %1295 = vmatprep.subr.bf16.mxu0 %v4433_v35  ;;  %1418 = vmatprep.subr.bf16.mxu1 %v4436_v36  ;;  %v4524_v35 = vld [vmem:[%s6068_s1 + $0x4c4] ss:$16 sps:$4 sm:$0xff]   ;;  %v4527_v36 = vld [vmem:[%s6068_s1 + $0x4cc] ss:$16 sps:$4 sm:$0xff]  }
  0x5f   :  { %1296 = vmatpush1.bf16.msra.mxu0 %v4431_v37  ;;  %1419 = vmatpush1.bf16.msra.mxu1 %v4434_v38  ;;  %v4522_v37 = vld [vmem:[%s6068_s1 + $0x4c0] ss:$16 sps:$4 sm:$0xff]   ;;  %v4525_v38 = vld [vmem:[%s6068_s1 + $0x4c8] ss:$16 sps:$4 sm:$0xff]  }
  0x60   :  { %1297 = vmatprep.subr.bf16.mxu0 %v4439_v39  ;;  %1420 = vmatprep.subr.bf16.mxu1 %v4442_v40  ;;  %v4530_v39 = vld [vmem:[%s6068_s1 + $0x4e4] ss:$16 sps:$4 sm:$0xff]   ;;  %v4533_v40 = vld [vmem:[%s6068_s1 + $0x4ec] ss:$16 sps:$4 sm:$0xff]  }
  0x63   :  { %1298 = vmatpush1.bf16.msra.mxu0 %v4437_v41  ;;  %1421 = vmatpush1.bf16.msra.mxu1 %v4440_v42  ;;  %v4528_v41 = vld [vmem:[%s6068_s1 + $0x4e0] ss:$16 sps:$4 sm:$0xff]   ;;  %v4531_v42 = vld [vmem:[%s6068_s1 + $0x4e8] ss:$16 sps:$4 sm:$0xff]  }
  0x64   :  { %1299 = vmatprep.subr.bf16.mxu0 %v4445_v43  ;;  %1422 = vmatprep.subr.bf16.mxu1 %v4448_v44  ;;  %v4536_v43 = vld [vmem:[%s6068_s1 + $0x504] ss:$16 sps:$4 sm:$0xff]   ;;  %v4539_v44 = vld [vmem:[%s6068_s1 + $0x50c] ss:$16 sps:$4 sm:$0xff]  }
  0x67   :  { %1300 = vmatpush1.bf16.msra.mxu0 %v4443_v45  ;;  %1423 = vmatpush1.bf16.msra.mxu1 %v4446_v46  ;;  %v4534_v45 = vld [vmem:[%s6068_s1 + $0x500] ss:$16 sps:$4 sm:$0xff]   ;;  %v4537_v46 = vld [vmem:[%s6068_s1 + $0x508] ss:$16 sps:$4 sm:$0xff]  }
  0x68   :  { %1301 = vmatprep.subr.bf16.mxu0 %v4451_v47  ;;  %1424 = vmatprep.subr.bf16.mxu1 %v4454_v48  ;;  %v4542_v47 = vld [vmem:[%s6068_s1 + $0x524] ss:$16 sps:$4 sm:$0xff]   ;;  %v4545_v48 = vld [vmem:[%s6068_s1 + $0x52c] ss:$16 sps:$4 sm:$0xff]  }
  0x6b   :  { %1302 = vmatpush1.bf16.msra.mxu0 %v4449_v49  ;;  %1425 = vmatpush1.bf16.msra.mxu1 %v4452_v50  ;;  %v4540_v49 = vld [vmem:[%s6068_s1 + $0x520] ss:$16 sps:$4 sm:$0xff]   ;;  %v4543_v50 = vld [vmem:[%s6068_s1 + $0x528] ss:$16 sps:$4 sm:$0xff]  }
  0x6c   :  { %1303 = vmatprep.subr.bf16.mxu0 %v4457_v51  ;;  %1426 = vmatprep.subr.bf16.mxu1 %v4460_v52  ;;  %v4548_v51 = vld [vmem:[%s6068_s1 + $0x544] ss:$16 sps:$4 sm:$0xff]   ;;  %v4551_v52 = vld [vmem:[%s6068_s1 + $0x54c] ss:$16 sps:$4 sm:$0xff]  }
  0x6f   :  { %1304 = vmatpush1.bf16.msra.mxu0 %v4455_v53  ;;  %1427 = vmatpush1.bf16.msra.mxu1 %v4458_v54  ;;  %v4546_v53 = vld [vmem:[%s6068_s1 + $0x540] ss:$16 sps:$4 sm:$0xff]   ;;  %v4549_v54 = vld [vmem:[%s6068_s1 + $0x548] ss:$16 sps:$4 sm:$0xff]  }
  0x70   :  { %1305 = vmatprep.subr.bf16.mxu0 %v4463_v55  ;;  %1428 = vmatprep.subr.bf16.mxu1 %v4466_v56  ;;  %v4554_v55 = vld [vmem:[%s6068_s1 + $0x564] ss:$16 sps:$4 sm:$0xff]   ;;  %v4557_v56 = vld [vmem:[%s6068_s1 + $0x56c] ss:$16 sps:$4 sm:$0xff]  }
  0x73   :  { %1306 = vmatpush1.bf16.msra.mxu0 %v4461_v57  ;;  %1429 = vmatpush1.bf16.msra.mxu1 %v4464_v58  ;;  %v4552_v57 = vld [vmem:[%s6068_s1 + $0x560] ss:$16 sps:$4 sm:$0xff]   ;;  %v4555_v58 = vld [vmem:[%s6068_s1 + $0x568] ss:$16 sps:$4 sm:$0xff]  }
  0x74   :  { %1307 = vmatprep.subr.bf16.mxu0 %v4469_v59  ;;  %1430 = vmatprep.subr.bf16.mxu1 %v4472_v60  ;;  %v4560_v59 = vld [vmem:[%s6068_s1 + $0x584] ss:$16 sps:$4 sm:$0xff]   ;;  %v4563_v60 = vld [vmem:[%s6068_s1 + $0x58c] ss:$16 sps:$4 sm:$0xff]  }
  0x77   :  { %1308 = vmatpush1.bf16.msra.mxu0 %v4467_v61  ;;  %1431 = vmatpush1.bf16.msra.mxu1 %v4470_v62  ;;  %v4558_v61 = vld [vmem:[%s6068_s1 + $0x580] ss:$16 sps:$4 sm:$0xff]   ;;  %v4561_v62 = vld [vmem:[%s6068_s1 + $0x588] ss:$16 sps:$4 sm:$0xff]  }
  0x78   :  { %1309 = vmatprep.subr.bf16.mxu0 %v4475_v63  ;;  %1432 = vmatprep.subr.bf16.mxu1 %v4478_v0  ;;  %v4566_v63 = vld [vmem:[%s6068_s1 + $0x5a4] ss:$16 sps:$4 sm:$0xff]   ;;  %v4569_v0 = vld [vmem:[%s6068_s1 + $0x5ac] ss:$16 sps:$4 sm:$0xff]  }
  0x7b   :  { %1310 = vmatpush1.bf16.msra.mxu0 %v4473_v1  ;;  %1433 = vmatpush1.bf16.msra.mxu1 %v4476_v2  ;;  %v4564_v1 = vld [vmem:[%s6068_s1 + $0x5a0] ss:$16 sps:$4 sm:$0xff]   ;;  %v4567_v2 = vld [vmem:[%s6068_s1 + $0x5a8] ss:$16 sps:$4 sm:$0xff]  }
  0x7c   :  { %1311 = vmatprep.subr.bf16.mxu0 %v4481_v3  ;;  %1434 = vmatprep.subr.bf16.mxu1 %v4484_v4  ;;  %v4572_v3 = vld [vmem:[%s6068_s1 + $0x5c4] ss:$16 sps:$4 sm:$0xff]   ;;  %v4575_v4 = vld [vmem:[%s6068_s1 + $0x5cc] ss:$16 sps:$4 sm:$0xff]  }
  0x7f   :  { %1312 = vmatpush1.bf16.msra.mxu0 %v4479_v5  ;;  %1435 = vmatpush1.bf16.msra.mxu1 %v4482_v6  ;;  %v4570_v5 = vld [vmem:[%s6068_s1 + $0x5c0] ss:$16 sps:$4 sm:$0xff]   ;;  %v4573_v6 = vld [vmem:[%s6068_s1 + $0x5c8] ss:$16 sps:$4 sm:$0xff]  }
  0x80   :  { %1322 = vmatprep.subr.bf16.mxu0 %v4488_v7  ;;  %1445 = vmatprep.subr.bf16.mxu1 %v4491_v8  ;;  %v4578_v7 = vld [vmem:[%s6068_s1 + $0x5e4] ss:$16 sps:$4 sm:$0xff]   ;;  %v4581_v8 = vld [vmem:[%s6068_s1 + $0x5ec] ss:$16 sps:$4 sm:$0xff]  }
  0x82   :  { %1314 = vmatmul.mubr.bf16.vlgmr.msra.gmra.mrb[0].mxu0 %v254_v9  ;;  %1437 = vmatmul.mubr.bf16.vlgmr.msra.gmra.mrb[0].mxu1 %v254_v9  ;;  %v4576_v9 = vld [vmem:[%s6068_s1 + $0x5e0] ss:$16 sps:$4 sm:$0xff]  }
  0x83   :  { %1323 = vmatpush1.bf16.msra.mxu0 %v4486_v10  ;;  %1446 = vmatpush1.bf16.msra.mxu1 %v4489_v11  ;;  %v4579_v10 = vld [vmem:[%s6068_s1 + $0x5e8] ss:$16 sps:$4 sm:$0xff]   ;;  %v4585_v11 = vld [vmem:[%s6070_s3 + $0x4] ss:$8 sps:$4 sm:$0xff]  }
  0x84   :  { %1324 = vmatprep.subr.bf16.mxu0 %v4494_v12  ;;  %1447 = vmatprep.subr.bf16.mxu1 %v4497_v14  ;;  %v256_v12 = vpack.c.bf16 %v5209_v13, %v5209_v13  ;;  %v4583_v14 = vld [vmem:[%s6070_s3] ss:$8 sps:$4 sm:$0xff]   ;;  %v4591_v13 = vld [vmem:[%s6070_s3 + $0x24] ss:$8 sps:$4 sm:$0xff]  }
  0x85   :  { %1354 = vmatprep.mubr.bf16.mxu0 %v257_v17  ;;  %1477 = vmatprep.mubr.bf16.mxu1 %v257_v17  ;;  %v4589_v17 = vld [vmem:[%s6070_s3 + $0x20] ss:$8 sps:$4 sm:$0xff]  }
  0x87   :  { %1325 = vmatpush1.bf16.msra.mxu0 %v4492_v16  ;;  %1448 = vmatpush1.bf16.msra.mxu1 %v4495_v18  ;;  %v4586_v16 = vld [vmem:[%s6070_s3 + $0x10] ss:$8 sps:$4 sm:$0xff]   ;;  %v4594_v18 = vld [vmem:[%s6070_s3 + $0x34] ss:$8 sps:$4 sm:$0xff]  }
  0x88   :  { %1326 = vmatprep.subr.bf16.mxu0 %v4500_v19  ;;  %1449 = vmatprep.subr.bf16.mxu1 %v4503_v20  ;;  %v4592_v19 = vld [vmem:[%s6070_s3 + $0x30] ss:$8 sps:$4 sm:$0xff]   ;;  %v4597_v20 = vld [vmem:[%s6070_s3 + $0x44] ss:$8 sps:$4 sm:$0xff]  }
  0x8b   :  { %1327 = vmatpush1.bf16.msra.mxu0 %v4498_v21  ;;  %1450 = vmatpush1.bf16.msra.mxu1 %v4501_v22  ;;  %v4595_v21 = vld [vmem:[%s6070_s3 + $0x40] ss:$8 sps:$4 sm:$0xff]   ;;  %v4600_v22 = vld [vmem:[%s6070_s3 + $0x54] ss:$8 sps:$4 sm:$0xff]  }
  0x8c   :  { %1328 = vmatprep.subr.bf16.mxu0 %v4506_v23  ;;  %1451 = vmatprep.subr.bf16.mxu1 %v4509_v24  ;;  %v4598_v23 = vld [vmem:[%s6070_s3 + $0x50] ss:$8 sps:$4 sm:$0xff]   ;;  %v4603_v24 = vld [vmem:[%s6070_s3 + $0x64] ss:$8 sps:$4 sm:$0xff]  }
  0x8f   :  { %1329 = vmatpush1.bf16.msra.mxu0 %v4504_v25  ;;  %1452 = vmatpush1.bf16.msra.mxu1 %v4507_v26  ;;  %v4601_v25 = vld [vmem:[%s6070_s3 + $0x60] ss:$8 sps:$4 sm:$0xff]   ;;  %v4606_v26 = vld [vmem:[%s6070_s3 + $0x74] ss:$8 sps:$4 sm:$0xff]  }
  0x90   :  { %1330 = vmatprep.subr.bf16.mxu0 %v4512_v27  ;;  %1453 = vmatprep.subr.bf16.mxu1 %v4515_v28  ;;  %v4604_v27 = vld [vmem:[%s6070_s3 + $0x70] ss:$8 sps:$4 sm:$0xff]   ;;  %v4609_v28 = vld [vmem:[%s6070_s3 + $0x84] ss:$8 sps:$4 sm:$0xff]  }
  0x93   :  { %1331 = vmatpush1.bf16.msra.mxu0 %v4510_v29  ;;  %1454 = vmatpush1.bf16.msra.mxu1 %v4513_v30  ;;  %v4607_v29 = vld [vmem:[%s6070_s3 + $0x80] ss:$8 sps:$4 sm:$0xff]   ;;  %v4612_v30 = vld [vmem:[%s6070_s3 + $0x94] ss:$8 sps:$4 sm:$0xff]  }
  0x94   :  { %1332 = vmatprep.subr.bf16.mxu0 %v4518_v31  ;;  %1455 = vmatprep.subr.bf16.mxu1 %v4521_v32  ;;  %v4610_v31 = vld [vmem:[%s6070_s3 + $0x90] ss:$8 sps:$4 sm:$0xff]   ;;  %v4615_v32 = vld [vmem:[%s6070_s3 + $0xa4] ss:$8 sps:$4 sm:$0xff]  }
  0x97   :  { %1333 = vmatpush1.bf16.msra.mxu0 %v4516_v33  ;;  %1456 = vmatpush1.bf16.msra.mxu1 %v4519_v34  ;;  %v4613_v33 = vld [vmem:[%s6070_s3 + $0xa0] ss:$8 sps:$4 sm:$0xff]   ;;  %v4618_v34 = vld [vmem:[%s6070_s3 + $0xb4] ss:$8 sps:$4 sm:$0xff]  }
  0x98   :  { %1334 = vmatprep.subr.bf16.mxu0 %v4524_v35  ;;  %1457 = vmatprep.subr.bf16.mxu1 %v4527_v36  ;;  %v4616_v35 = vld [vmem:[%s6070_s3 + $0xb0] ss:$8 sps:$4 sm:$0xff]   ;;  %v4621_v36 = vld [vmem:[%s6070_s3 + $0xc4] ss:$8 sps:$4 sm:$0xff]  }
  0x9b   :  { %1335 = vmatpush1.bf16.msra.mxu0 %v4522_v37  ;;  %1458 = vmatpush1.bf16.msra.mxu1 %v4525_v38  ;;  %v4619_v37 = vld [vmem:[%s6070_s3 + $0xc0] ss:$8 sps:$4 sm:$0xff]   ;;  %v4624_v38 = vld [vmem:[%s6070_s3 + $0xd4] ss:$8 sps:$4 sm:$0xff]  }
  0x9c   :  { %1336 = vmatprep.subr.bf16.mxu0 %v4530_v39  ;;  %1459 = vmatprep.subr.bf16.mxu1 %v4533_v40  ;;  %v4622_v39 = vld [vmem:[%s6070_s3 + $0xd0] ss:$8 sps:$4 sm:$0xff]   ;;  %v4627_v40 = vld [vmem:[%s6070_s3 + $0xe4] ss:$8 sps:$4 sm:$0xff]  }
  0x9f   :  { %1337 = vmatpush1.bf16.msra.mxu0 %v4528_v41  ;;  %1460 = vmatpush1.bf16.msra.mxu1 %v4531_v42  ;;  %v4625_v41 = vld [vmem:[%s6070_s3 + $0xe0] ss:$8 sps:$4 sm:$0xff]   ;;  %v4630_v42 = vld [vmem:[%s6070_s3 + $0xf4] ss:$8 sps:$4 sm:$0xff]  }
  0xa0   :  { %1338 = vmatprep.subr.bf16.mxu0 %v4536_v43  ;;  %1461 = vmatprep.subr.bf16.mxu1 %v4539_v44  ;;  %v4628_v43 = vld [vmem:[%s6070_s3 + $0xf0] ss:$8 sps:$4 sm:$0xff]   ;;  %v4633_v44 = vld [vmem:[%s6070_s3 + $0x104] ss:$8 sps:$4 sm:$0xff]  }
  0xa3   :  { %1339 = vmatpush1.bf16.msra.mxu0 %v4534_v45  ;;  %1462 = vmatpush1.bf16.msra.mxu1 %v4537_v46  ;;  %v1984_v45 = vld [vmem:[%s6071_s4 + $0x80] sm:$0xff]  ;;  %v1985_v46 = vld [vmem:[%s6071_s4 + $0x88] sm:$0xff] }
  0xa4   :  { %1340 = vmatprep.subr.bf16.mxu0 %v4542_v47  ;;  %1463 = vmatprep.subr.bf16.mxu1 %v4545_v48  ;;  %v1968_v47 = vld [vmem:[%s6071_s4] sm:$0xff]  ;;  %v5500_v48 = vpack.c.bf16 %v1985_v46, %v1984_v45 }
  0xa5   :  { %v4651_v45 = vld [vmem:[%s6070_s3 + $0x164] ss:$8 sps:$4 sm:$0xff]   ;;  %v4649_v46 = vld [vmem:[%s6070_s3 + $0x160] ss:$8 sps:$4 sm:$0xff]  }
  0xa7   :  { %1341 = vmatpush1.bf16.msra.mxu0 %v4540_v49  ;;  %1464 = vmatpush1.bf16.msra.mxu1 %v4543_v50  ;;  %v1969_v49 = vld [vmem:[%s6071_s4 + $0x8] sm:$0xff]  ;;  %v1986_v50 = vld [vmem:[%s6071_s4 + $0x90] sm:$0xff] }
  0xa8   :  { %1342 = vmatprep.subr.bf16.mxu0 %v4548_v51  ;;  %1465 = vmatprep.subr.bf16.mxu1 %v4551_v52  ;;  %v1987_v51 = vld [vmem:[%s6071_s4 + $0x98] sm:$0xff]  ;;  %v5511_v52 = vpack.c.bf16 %v1969_v49, %v1968_v47 }
  0xa9   :  { %v4654_v47 = vld [vmem:[%s6070_s3 + $0x174] ss:$8 sps:$4 sm:$0xff]   ;;  %v4652_v49 = vld [vmem:[%s6070_s3 + $0x170] ss:$8 sps:$4 sm:$0xff]  }
  0xab   :  { %1343 = vmatpush1.bf16.msra.mxu0 %v4546_v53  ;;  %1466 = vmatpush1.bf16.msra.mxu1 %v4549_v54  ;;  %v5513_v53 = vpack.c.bf16 %v1987_v51, %v1986_v50  ;;  %v1970_v54 = vld [vmem:[%s6071_s4 + $0x10] sm:$0xff]  ;;  %v4657_v50 = vld [vmem:[%s6070_s3 + $0x184] ss:$8 sps:$4 sm:$0xff]   ;;  %v4655_v51 = vld [vmem:[%s6070_s3 + $0x180] ss:$8 sps:$4 sm:$0xff]  }
  0xac   :  { %1344 = vmatprep.subr.bf16.mxu0 %v4554_v55  ;;  %1467 = vmatprep.subr.bf16.mxu1 %v4557_v56  ;;  %v1971_v55 = vld [vmem:[%s6071_s4 + $0x18] sm:$0xff]  ;;  %v1988_v56 = vld [vmem:[%s6071_s4 + $0xa0] sm:$0xff] }
  0xaf   :  { %1345 = vmatpush1.bf16.msra.mxu0 %v4552_v57  ;;  %1468 = vmatpush1.bf16.msra.mxu1 %v4555_v58  ;;  %v1989_v57 = vld [vmem:[%s6071_s4 + $0xa8] sm:$0xff]  ;;  %v5529_v58 = vpack.c.bf16 %v1971_v55, %v1970_v54  ;;  %v4660_v54 = vld [vmem:[%s6070_s3 + $0x194] ss:$8 sps:$4 sm:$0xff]   ;;  %v4658_v55 = vld [vmem:[%s6070_s3 + $0x190] ss:$8 sps:$4 sm:$0xff]  }
  0xb0   :  { %1346 = vmatprep.subr.bf16.mxu0 %v4560_v59  ;;  %1469 = vmatprep.subr.bf16.mxu1 %v4563_v60  ;;  %v5532_v59 = vpack.c.bf16 %v1989_v57, %v1988_v56  ;;  %v1972_v60 = vld [vmem:[%s6071_s4 + $0x20] sm:$0xff] }
  0xb1   :  { %v4663_v56 = vld [vmem:[%s6070_s3 + $0x1a4] ss:$8 sps:$4 sm:$0xff]   ;;  %v4661_v57 = vld [vmem:[%s6070_s3 + $0x1a0] ss:$8 sps:$4 sm:$0xff]  }
  0xb3   :  { %1347 = vmatpush1.bf16.msra.mxu0 %v4558_v61  ;;  %1470 = vmatpush1.bf16.msra.mxu1 %v4561_v62  ;;  %v1973_v61 = vld [vmem:[%s6071_s4 + $0x28] sm:$0xff]  ;;  %v1990_v62 = vld [vmem:[%s6071_s4 + $0xb0] sm:$0xff] }
  0xb4   :  { %1348 = vmatprep.subr.bf16.mxu0 %v4566_v63  ;;  %1471 = vmatprep.subr.bf16.mxu1 %v4569_v0  ;;  %v1991_v63 = vld [vmem:[%s6071_s4 + $0xb8] sm:$0xff]  ;;  %v5547_v0 = vpack.c.bf16 %v1973_v61, %v1972_v60 }
  0xb5   :  { %v4666_v60 = vld [vmem:[%s6070_s3 + $0x1b4] ss:$8 sps:$4 sm:$0xff]   ;;  %v4664_v61 = vld [vmem:[%s6070_s3 + $0x1b0] ss:$8 sps:$4 sm:$0xff]  }
  0xb7   :  { %1349 = vmatpush1.bf16.msra.mxu0 %v4564_v1  ;;  %1472 = vmatpush1.bf16.msra.mxu1 %v4567_v2  ;;  %v5550_v1 = vpack.c.bf16 %v1991_v63, %v1990_v62  ;;  %v1974_v2 = vld [vmem:[%s6071_s4 + $0x30] sm:$0xff]  ;;  %v4669_v62 = vld [vmem:[%s6070_s3 + $0x1c4] ss:$8 sps:$4 sm:$0xff]  }
  0xb8   :  { %1350 = vmatprep.subr.bf16.mxu0 %v4572_v3  ;;  %1473 = vmatprep.subr.bf16.mxu1 %v4575_v4  ;;  %v1975_v3 = vld [vmem:[%s6071_s4 + $0x38] sm:$0xff] }
  0xb9   :  { %v5559_v4 = vpack.c.bf16 %v1975_v3, %v1974_v2  ;;  %v4667_v2 = vld [vmem:[%s6070_s3 + $0x1c0] ss:$8 sps:$4 sm:$0xff]   ;;  %v4672_v3 = vld [vmem:[%s6070_s3 + $0x1d4] ss:$8 sps:$4 sm:$0xff]  }
  0xbb   :  { %1351 = vmatpush1.bf16.msra.mxu0 %v4570_v5  ;;  %1474 = vmatpush1.bf16.msra.mxu1 %v4573_v6  ;;  %v260_v5 = vlaneseq }
  0xbc   :  { %1352 = vmatprep.subr.bf16.mxu0 %v4578_v7  ;;  %1475 = vmatprep.subr.bf16.mxu1 %v4581_v8  ;;  %v5571_v8 = vld [vmem:[%s6072_s2] sm:$0xf] }
  0xbd   :  { %v5563_v6 = vshrl.u32 %v260_v5, 7 }
  0xbf   :  { %1353 = vmatpush1.bf16.msra.mxu0 %v4576_v9  ;;  %1476 = vmatpush1.bf16.msra.mxu1 %v4579_v10  ;;  %v5566_v7 = vsub.s32 0, %v5563_v6  ;;  %v266_v9 = vsub.s32 1, %v5563_v6  ;;  %v274_v10 = vsub.s32 3, %v5563_v6  ;;  %v270_v63 = vsub.s32 2, %v5563_v6  ;;  %v4675_v6 = vld [vmem:[%s6070_s3 + $0x1e4] ss:$8 sps:$4 sm:$0xff]  }
  0xc0   :  { %1886 = vmatprep.subr.bf16.mxu0 %v4585_v11  ;;  %4086 = vmatprep.subr.bf16.mxu1 %v5500_v48 }
  0xc1   :  { %v263_v11 = vrot.slane %v5571_v8, %v5566_v7  ;;  %v271_v5 = vrot.slane %v5571_v8, %v270_v63  ;;  %v2001_v63 = vld [vmem:[%s6073_s5 + $0x8] sm:$0xff] }
  0xc2   :  { %1355 = vmatmul.mubr.bf16.vlgmr.msra.gmra.mrb[0].mxu0 %v256_v12  ;;  %1478 = vmatmul.mubr.bf16.vlgmr.msra.gmra.mrb[0].mxu1 %v256_v12  ;;  %v267_v12 = vrot.slane %v5571_v8, %v266_v9  ;;  %v4670_v9 = vld [vmem:[%s6070_s3 + $0x1d0] ss:$8 sps:$4 sm:$0xff]  }
  0xc3   :  { %1887 = vmatpush1.bf16.msra.mxu0 %v4583_v14  ;;  %4088 = vmatpush3.bf16.msra.mxu1 %v5511_v52  ;;  %v275_v14 = vrot.slane %v5571_v8, %v274_v10  ;;  %v4678_v8 = vld [vmem:[%s6070_s3 + $0x1f4] ss:$8 sps:$4 sm:$0xff]  }
  0xc4   :  { %1888 = vmatprep.subr.bf16.mxu0 %v4588_v15  ;;  %4090 = vmatprep.subr.bf16.mxu1 %v5513_v53 }
  0xc7   :  { %1889 = vmatpush1.bf16.msra.mxu0 %v4586_v16  ;;  %4092 = vmatpush3.bf16.msra.mxu1 %v5529_v58 }
  0xc8   :  { %1890 = vmatprep.subr.bf16.mxu0 %v4591_v13  ;;  %4094 = vmatprep.subr.bf16.mxu1 %v5532_v59 }
  0xcb   :  { %1891 = vmatpush1.bf16.msra.mxu0 %v4589_v17  ;;  %4096 = vmatpush3.bf16.msra.mxu1 %v5547_v0 }
  0xcc   :  { %1892 = vmatprep.subr.bf16.mxu0 %v4594_v18  ;;  %4098 = vmatprep.subr.bf16.mxu1 %v5550_v1 }
  0xcf   :  { %1893 = vmatpush1.bf16.msra.mxu0 %v4592_v19  ;;  %4100 = vmatpush3.bf16.msra.mxu1 %v5559_v4 }
  0xd0   :  { %1894 = vmatprep.subr.bf16.mxu0 %v4597_v20 }
  0xd3   :  { %1895 = vmatpush1.bf16.msra.mxu0 %v4595_v21 }
  0xd4   :  { %1896 = vmatprep.subr.bf16.mxu0 %v4600_v22 }
  0xd7   :  { %1897 = vmatpush1.bf16.msra.mxu0 %v4598_v23 }
  0xd8   :  { %1898 = vmatprep.subr.bf16.mxu0 %v4603_v24 }
  0xdb   :  { %1899 = vmatpush1.bf16.msra.mxu0 %v4601_v25 }
  0xdc   :  { %1900 = vmatprep.subr.bf16.mxu0 %v4606_v26 }
  0xdf   :  { %1901 = vmatpush1.bf16.msra.mxu0 %v4604_v27 }
  0xe0   :  { %1902 = vmatprep.subr.bf16.mxu0 %v4609_v28 }
  0xe3   :  { %1903 = vmatpush1.bf16.msra.mxu0 %v4607_v29 }
  0xe4   :  { %1904 = vmatprep.subr.bf16.mxu0 %v4612_v30 }
  0xe7   :  { %1905 = vmatpush1.bf16.msra.mxu0 %v4610_v31 }
  0xe8   :  { %1906 = vmatprep.subr.bf16.mxu0 %v4615_v32  ;;  %v4631_v32 = vld [vmem:[%s6070_s3 + $0x100] ss:$8 sps:$4 sm:$0xff]  }
  0xeb   :  { %1907 = vmatpush1.bf16.msra.mxu0 %v4613_v33 }
  0xec   :  { %1908 = vmatprep.subr.bf16.mxu0 %v4618_v34  ;;  %v4636_v34 = vld [vmem:[%s6070_s3 + $0x114] ss:$8 sps:$4 sm:$0xff]  }
  0xef   :  { %1909 = vmatpush1.bf16.msra.mxu0 %v4616_v35 }
  0xf0   :  { %1910 = vmatprep.subr.bf16.mxu0 %v4621_v36  ;;  %v4634_v36 = vld [vmem:[%s6070_s3 + $0x110] ss:$8 sps:$4 sm:$0xff]  }
  0xf3   :  { %1911 = vmatpush1.bf16.msra.mxu0 %v4619_v37  ;;  %v4639_v37 = vld [vmem:[%s6070_s3 + $0x124] ss:$8 sps:$4 sm:$0xff]  }
  0xf4   :  { %1912 = vmatprep.subr.bf16.mxu0 %v4624_v38  ;;  %v4637_v38 = vld [vmem:[%s6070_s3 + $0x120] ss:$8 sps:$4 sm:$0xff]  }
  0xf7   :  { %1913 = vmatpush1.bf16.msra.mxu0 %v4622_v39  ;;  %v4642_v39 = vld [vmem:[%s6070_s3 + $0x134] ss:$8 sps:$4 sm:$0xff]  }
  0xf8   :  { %1914 = vmatprep.subr.bf16.mxu0 %v4627_v40  ;;  %v4640_v40 = vld [vmem:[%s6070_s3 + $0x130] ss:$8 sps:$4 sm:$0xff]  }
  0xfb   :  { %1915 = vmatpush1.bf16.msra.mxu0 %v4625_v41  ;;  %v4645_v41 = vld [vmem:[%s6070_s3 + $0x144] ss:$8 sps:$4 sm:$0xff]  }
  0xfc   :  { %1916 = vmatprep.subr.bf16.mxu0 %v4630_v42  ;;  %v4643_v42 = vld [vmem:[%s6070_s3 + $0x140] ss:$8 sps:$4 sm:$0xff]  }
  0xff   :  { %1917 = vmatpush1.bf16.msra.mxu0 %v4628_v43  ;;  %v4648_v43 = vld [vmem:[%s6070_s3 + $0x154] ss:$8 sps:$4 sm:$0xff]  }
 0x100   :  { %1927 = vmatprep.subr.bf16.mxu0 %v4633_v44  ;;  %v4646_v44 = vld [vmem:[%s6070_s3 + $0x150] ss:$8 sps:$4 sm:$0xff]  }
 0x195   :  { %v1356_v15 = vpop.f32.mrb[0].mxu0  ;;  %v5579_v16 = vpop.f32.mrb[0].mxu1 }
 0x196   :  { %v4265_v13 = vadd.f32 %v1356_v15, %v263_v11  ;;  %v1358_v17 = vpop.f32.mrb[1].mxu0  ;;  %v1481_v18 = vpop.f32.mrb[1].mxu1  ;;  %v4267_v10 = vadd.f32 %v5579_v16, %v271_v5  ;;  %v4673_v11 = vld [vmem:[%s6070_s3 + $0x1e0] ss:$8 sps:$4 sm:$0xff]  }
 0x197   :  { %v4266_v19 = vadd.f32 %v1358_v17, %v267_v12  ;;  %v4268_v20 = vadd.f32 %v1481_v18, %v275_v14  ;;  %v1360_v21 = vpop.f32.mrb[2].mxu0  ;;  %v1483_v22 = vpop.f32.mrb[2].mxu1  ;;  %v4676_v14 = vld [vmem:[%s6070_s3 + $0x1f0] ss:$8 sps:$4 sm:$0xff]   ;;  %v1993_v17 = vld [vmem:[%s6071_s4 + $0xc8] sm:$0xff]  ;;  %v2000_v5 = vld [vmem:[%s6073_s5] sm:$0xff] }
 0x198   :  { %vm1486_vm0 = vcmp.gt.f32.partialorder %v4265_v13, 0.0  ;;  %v1490_v23 = vmul.f32 0.2, %v4265_v13  ;;  %v1361_v27 = vpop.f32.mrb[3].mxu0  ;;  %v1484_v28 = vpop.f32.mrb[3].mxu1  ;;  %vm1488_vm3 = vcmp.gt.f32.partialorder %v4267_v10, 0.0 }
 0x199   :  { %vm1487_vm1 = vcmp.gt.f32.partialorder %v4266_v19, 0.0  ;;  %v1491_v24 = vmul.f32 0.2, %v4266_v19  ;;  %vm1489_vm2 = vcmp.gt.f32.partialorder %v4268_v20, 0.0  ;;  %v1493_v25 = vmul.f32 0.2, %v4268_v20 }
 0x19a   :  { %v1494_v26 = vsel %vm1486_vm0, %v4265_v13, %v1490_v23  ;;  %v1492_v12 = vmul.f32 0.2, %v4267_v10  ;;  %v1992_v13 = vld [vmem:[%s6071_s4 + $0xc0] sm:$0xff]  ;;  %v1994_v22 = vld [vmem:[%s6071_s4 + $0xd0] sm:$0xff]  ;;  %v1995_v23 = vld [vmem:[%s6071_s4 + $0xd8] sm:$0xff] }
 0x19b   :  { %v1495_v29 = vsel %vm1487_vm1, %v4266_v19, %v1491_v24  ;;  %v1497_v30 = vsel %vm1489_vm2, %v4268_v20, %v1493_v25  ;;  %v1562_v33 = vpack.c.bf16 %v1494_v26, %v1494_v26  ;;  %v5683_v18 = vpack.c.bf16 %v1993_v17, %v1992_v13  ;;  %v1976_v19 = vld [vmem:[%s6071_s4 + $0x40] sm:$0xff]  ;;  %v1977_v20 = vld [vmem:[%s6071_s4 + $0x48] sm:$0xff]  ;;  %v1978_v25 = vld [vmem:[%s6071_s4 + $0x50] sm:$0xff] }
 0x19c   :  { %v1563_v31 = vpack.c.bf16 %v1495_v29, %v1495_v29  ;;  %v1565_v35 = vpack.c.bf16 %v1497_v30, %v1497_v30  ;;  %v1496_v15 = vsel %vm1488_vm3, %v4267_v10, %v1492_v12  ;;  %v5691_v21 = vpack.c.bf16 %v1977_v20, %v1976_v19  ;;  %v1979_v26 = vld [vmem:[%s6071_s4 + $0x58] sm:$0xff]  ;;  %v1996_v28 = vld [vmem:[%s6071_s4 + $0xe0] sm:$0xff]  ;;  %v1997_v29 = vld [vmem:[%s6071_s4 + $0xe8] sm:$0xff] }
 0x19d   :  { %v1564_v16 = vpack.c.bf16 %v1496_v15, %v1496_v15  ;;  %4102 = vmatprep.subr.bf16.mxu1 %v5683_v18  ;;  %v5701_v24 = vpack.c.bf16 %v1995_v23, %v1994_v22  ;;  %v5709_v27 = vpack.c.bf16 %v1979_v26, %v1978_v25  ;;  %v5719_v30 = vpack.c.bf16 %v1997_v29, %v1996_v28  ;;  %v4679_v28 = vld [vmem:[%s6074_s6 + $0x40] sm:$0xff]  }
 0x19e   :  { %1918 = vmatprep.mubr.bf16.mxu0 %v1563_v31  ;;  %4104 = vmatpush3.bf16.msra.mxu1 %v5691_v21  ;;  %v1980_v31 = vld [vmem:[%s6071_s4 + $0x60] sm:$0xff]  ;;  %v4717_v10 = vmov 0.0  }
 0x19f   :  { %1919 = vmatmul.mubr.bf16.vlgmr.msra.gmra.mrb[4].mxu0 %v1562_v33  ;;  %4106 = vmatprep.subr.bf16.mxu1 %v5701_v24 }
 0x1a0   :  { %1928 = vmatpush1.bf16.msra.mxu0 %v4631_v32  ;;  %1959 = vmatprep.mubr.bf16.mxu0 %v1565_v35  ;;  %v1981_v32 = vld [vmem:[%s6071_s4 + $0x68] sm:$0xff]  ;;  %v1999_v35 = vld [vmem:[%s6071_s4 + $0xf8] sm:$0xff] }
 0x1a1   :  { %1929 = vmatprep.subr.bf16.mxu0 %v4636_v34  ;;  %v4111_v33 = vpack.c.bf16 %v1981_v32, %v1980_v31  ;;  %v1998_v34 = vld [vmem:[%s6071_s4 + $0xf0] sm:$0xff] }
 0x1a2   :  { %4108 = vmatpush3.bf16.msra.mxu1 %v5709_v27 }
 0x1a3   :  { %4110 = vmatprep.subr.bf16.mxu1 %v5719_v30 }
 0x1a4   :  { %1930 = vmatpush1.bf16.msra.mxu0 %v4634_v36  ;;  %v4113_v36 = vpack.c.bf16 %v1999_v35, %v1998_v34  ;;  %v4680_v34 = vld [vmem:[%s6074_s6] sm:$0xff]   ;;  %v4681_v35 = vld [vmem:[%s6074_s6 + $0x48] sm:$0xff]  }
 0x1a5   :  { %1931 = vmatprep.subr.bf16.mxu0 %v4639_v37  ;;  %v1982_v37 = vld [vmem:[%s6071_s4 + $0x70] sm:$0xff] }
 0x1a6   :  { %4112 = vmatpush3.bf16.msra.mxu1 %v4111_v33 }
 0x1a7   :  { %4114 = vmatprep.subr.bf16.mxu1 %v4113_v36 }
 0x1a8   :  { %1932 = vmatpush1.bf16.msra.mxu0 %v4637_v38  ;;  %v1983_v38 = vld [vmem:[%s6071_s4 + $0x78] sm:$0xff] }
 0x1a9   :  { %1933 = vmatprep.subr.bf16.mxu0 %v4642_v39  ;;  %v4115_v39 = vpack.c.bf16 %v1983_v38, %v1982_v37  ;;  %v4682_v37 = vld [vmem:[%s6074_s6 + $0x8] sm:$0xff]   ;;  %v4683_v38 = vld [vmem:[%s6074_s6 + $0x50] sm:$0xff]  }
 0x1ab   :  { %4116 = vmatpush3.bf16.msra.mxu1 %v4115_v39 }
 0x1ac   :  { %1934 = vmatpush1.bf16.msra.mxu0 %v4640_v40 }
 0x1ad   :  { %1935 = vmatprep.subr.bf16.mxu0 %v4645_v41 }
 0x1b0   :  { %1936 = vmatpush1.bf16.msra.mxu0 %v4643_v42 }
 0x1b1   :  { %1937 = vmatprep.subr.bf16.mxu0 %v4648_v43 }
 0x1b4   :  { %1938 = vmatpush1.bf16.msra.mxu0 %v4646_v44 }
 0x1b5   :  { %1939 = vmatprep.subr.bf16.mxu0 %v4651_v45 }
 0x1b8   :  { %1940 = vmatpush1.bf16.msra.mxu0 %v4649_v46 }
 0x1b9   :  { %1941 = vmatprep.subr.bf16.mxu0 %v4654_v47 }
 0x1bc   :  { %1942 = vmatpush1.bf16.msra.mxu0 %v4652_v49 }
 0x1bd   :  { %1943 = vmatprep.subr.bf16.mxu0 %v4657_v50 }
 0x1c0   :  { %1944 = vmatpush1.bf16.msra.mxu0 %v4655_v51 }
 0x1c1   :  { %1945 = vmatprep.subr.bf16.mxu0 %v4660_v54 }
 0x1c4   :  { %1946 = vmatpush1.bf16.msra.mxu0 %v4658_v55 }
 0x1c5   :  { %1947 = vmatprep.subr.bf16.mxu0 %v4663_v56 }
 0x1c8   :  { %1948 = vmatpush1.bf16.msra.mxu0 %v4661_v57 }
 0x1c9   :  { %1949 = vmatprep.subr.bf16.mxu0 %v4666_v60 }
 0x1cc   :  { %1950 = vmatpush1.bf16.msra.mxu0 %v4664_v61 }
 0x1cd   :  { %1951 = vmatprep.subr.bf16.mxu0 %v4669_v62 }
 0x1d0   :  { %1952 = vmatpush1.bf16.msra.mxu0 %v4667_v2  ;;  %v2003_v2 = vld [vmem:[%s6073_s5 + $0x18] sm:$0xff] }
 0x1d1   :  { %1953 = vmatprep.subr.bf16.mxu0 %v4672_v3  ;;  %v4117_v3 = vpack.c.bf16 %v2003_v2, %v2001_v63  ;;  %v2529_v63 = vld [vmem:[%s6075_s7 + $0x28] sm:$0xff] }
 0x1d3   :  { %4118 = vmatprep.subr.bf16.mxu1 %v4117_v3 }
 0x1d4   :  { %1954 = vmatpush1.bf16.msra.mxu0 %v4670_v9  ;;  %v2002_v9 = vld [vmem:[%s6073_s5 + $0x10] sm:$0xff] }
 0x1d5   :  { %1955 = vmatprep.subr.bf16.mxu0 %v4675_v6  ;;  %v4119_v6 = vpack.c.bf16 %v2002_v9, %v2000_v5  ;;  %v2531_v5 = vld [vmem:[%s6075_s7 + $0x38] sm:$0xff] }
 0x1d8   :  { %1956 = vmatpush1.bf16.msra.mxu0 %v4673_v11 }
 0x1d9   :  { %1957 = vmatprep.subr.bf16.mxu0 %v4678_v8 }
 0x1dc   :  { %1958 = vmatpush1.bf16.msra.mxu0 %v4676_v14 }
 0x1df   :  { %1960 = vmatmul.mubr.bf16.vlgmr.msra.gmra.mrb[4].mxu0 %v1564_v16 }
 0x1e0   :  { %3963 = vmatprep.mubr.msk.f32.mxu0 %vm4719_vm8, %v4717_v10 }
 0x2b2   :  { %v1961_v40 = vpop.f32.mrb[4].mxu0 }
 0x2b3   :  { %v2005_v41 = vsel %vm2004_vm4, %v1961_v40, 0.0  ;;  %v1963_v42 = vpop.f32.mrb[5].mxu0 }
 0x2b4   :  { %v2006_v43 = vrot.slane %v2005_v41, 4  ;;  %v2012_v44 = vsel %vm2004_vm4, %v1963_v42, 0.0  ;;  %v1965_v45 = vpop.f32.mrb[6].mxu0 }
 0x2b5   :  { %v2013_v46 = vrot.slane %v2012_v44, 4  ;;  %v1966_v47 = vpop.f32.mrb[7].mxu0  ;;  %v4690_v45 = vld [vmem:[%s6074_s6 + $0x28] sm:$0xff]  }
 0x2b6   :  { %v2007_v49 = vadd.f32 %v2006_v43, %v2005_v41  ;;  %v4686_v41 = vld [vmem:[%s6074_s6 + $0x18] sm:$0xff]   ;;  %v4688_v43 = vld [vmem:[%s6074_s6 + $0x20] sm:$0xff]   ;;  %v4692_v47 = vld [vmem:[%s6074_s6 + $0x30] sm:$0xff]  }
 0x2b7   :  { %v2014_v50 = vadd.f32 %v2013_v46, %v2012_v44  ;;  %v4689_v44 = vld [vmem:[%s6074_s6 + $0x68] sm:$0xff]   ;;  %v4691_v46 = vld [vmem:[%s6074_s6 + $0x70] sm:$0xff]  }
 0x2b8   :  { %v2008_v51 = vrot.slane %v2007_v49, 2 }
 0x2b9   :  { %v2015_v54 = vrot.slane %v2014_v50, 2 }
 0x2ba   :  { %v2009_v55 = vadd.f32 %v2008_v51, %v2007_v49  ;;  %v4693_v49 = vld [vmem:[%s6074_s6 + $0x78] sm:$0xff]   ;;  %v4718_v51 = vmov 0.0|0.0  }
 0x2bb   :  { %v2016_v56 = vadd.f32 %v2015_v54, %v2014_v50  ;;  %v4694_v50 = vld [vmem:[%s6074_s6 + $0x38] sm:$0xff]   ;;  %v2524_v54 = vld [vmem:[%s6075_s7] sm:$0xff]  ;;  %4187 = vmatprep.subr.bf16.mxu0 %v4718_v51 }
 0x2bc   :  { %v2010_v57 = vrot.slane %v2009_v55, 1 }
 0x2bd   :  { %v2017_v60 = vrot.slane %v2016_v56, 1 }
 0x2be   :  { %v2011_v62 = vadd.f32 %v2010_v57, %v2009_v55  ;;  %v2525_v55 = vld [vmem:[%s6075_s7 + $0x8] sm:$0xff]  ;;  %v2526_v57 = vld [vmem:[%s6075_s7 + $0x10] sm:$0xff] }
 0x2bf   :  { %v2018_v61 = vadd.f32 %v2017_v60, %v2016_v56  ;;  %v4158_v56 = vpack.c.bf16 %v2525_v55, %v2524_v54  ;;  %v2527_v60 = vld [vmem:[%s6075_s7 + $0x18] sm:$0xff] }
 0x2c1   :  { %2083 = vmatprep.mubr.f32.mxu1 %v2018_v61  ;;  %4189 = vmatpush3.bf16.msra.mxu0 %v4158_v56  ;;  %v4161_v61 = vpack.c.bf16 %v2527_v60, %v2526_v57 }
 0x2c2   :  { %2084 = vmatmul.mubr.f32.vlgmr.msra.gmra.mrb[4].mxu1 %v2011_v62  ;;  %4190 = vmatprep.subr.bf16.mxu0 %v4718_v51  ;;  %v2528_v62 = vld [vmem:[%s6075_s7 + $0x20] sm:$0xff] }
 0x2c3   :  { %4120 = vmatpush1.bf16.msra.mxu1 %v4119_v6  ;;  %2158 = vmatprep.mubr.f32.mxu1 %v4717_v10  ;;  %v4164_v2 = vpack.c.bf16 %v2529_v63, %v2528_v62 }
 0x2c4   :  { %4122 = vmatprep.subr.bf16.mxu1 %v5500_v48 }
 0x2c5   :  { %4192 = vmatpush3.bf16.msra.mxu0 %v4161_v61 }
 0x2c6   :  { %4193 = vmatprep.subr.bf16.mxu0 %v4718_v51 }
 0x2c9   :  { %4195 = vmatpush3.bf16.msra.mxu0 %v4164_v2 }
 0x2ca   :  { %4196 = vmatprep.subr.bf16.mxu0 %v4718_v51 }
 0x395   :  { %v3731_v11 = vpop.f32.mrb[4].mxu1 }
 0x396   :  { %v3732_v8 = vpop.f32.mrb[5].mxu1 }
 0x397   :  { %v3733_v12 = vadd.f32 %v3732_v8, %v3731_v11 }
 0x399   :  { %v2089_v14 = vmul.f32 0.015625, %v3733_v12 }
 0x39b   :  { %3661 = vmatmul.mubr.msk.f32.vlgmr.msra.gmra.mrb[6].mxu1 %vm2090_vm5, %v2089_v14 }
 0x39c   :  { %4124 = vmatpush3.bf16.msra.mxu1 %v5511_v52 }
 0x39d   :  { %4126 = vmatprep.subr.bf16.mxu1 %v5513_v53 }
 0x3a0   :  { %4128 = vmatpush3.bf16.msra.mxu1 %v5529_v58 }
 0x3a1   :  { %4130 = vmatprep.subr.bf16.mxu1 %v5532_v59 }
 0x3a4   :  { %4132 = vmatpush3.bf16.msra.mxu1 %v5547_v0 }
 0x3a5   :  { %4134 = vmatprep.subr.bf16.mxu1 %v5550_v1 }
 0x3a8   :  { %4136 = vmatpush3.bf16.msra.mxu1 %v5559_v4 }
 0x3a9   :  { %4138 = vmatprep.subr.bf16.mxu1 %v5683_v18 }
 0x3ac   :  { %4140 = vmatpush3.bf16.msra.mxu1 %v5691_v21 }
 0x3ad   :  { %4142 = vmatprep.subr.bf16.mxu1 %v5701_v24 }
 0x3b0   :  { %4144 = vmatpush3.bf16.msra.mxu1 %v5709_v27 }
 0x3b1   :  { %4146 = vmatprep.subr.bf16.mxu1 %v5719_v30 }
 0x3b4   :  { %4148 = vmatpush3.bf16.msra.mxu1 %v4111_v33 }
 0x3b5   :  { %4150 = vmatprep.subr.bf16.mxu1 %v4113_v36 }
 0x3b8   :  { %4152 = vmatpush3.bf16.msra.mxu1 %v4115_v39  ;;  %v4684_v39 = vld [vmem:[%s6074_s6 + $0x10] sm:$0xff]  }
 0x3b9   :  { %4154 = vmatprep.subr.bf16.mxu1 %v4117_v3  ;;  %v2530_v3 = vld [vmem:[%s6075_s7 + $0x30] sm:$0xff] }
 0x3ba   :  { %v4167_v9 = vpack.c.bf16 %v2531_v5, %v2530_v3 }
 0x3bc   :  { %4198 = vmatpush3.bf16.msra.mxu0 %v4167_v9 }
 0x3bd   :  { %4199 = vmatprep.subr.bf16.mxu0 %v4718_v51 }
 0x46e   :  { %v2160_v48 = vpop.f32.mrb[6].mxu1 }
 0x46f   :  { %v2168_v52 = vrot.slane %v2160_v48, %v5566_v7  ;;  %v2162_v53 = vpop.f32.mrb[7].mxu1 }
 0x470   :  { %v2172_v58 = vrot.slane %v2162_v53, %v5566_v7 }
 0x471   :  { %v5771_v59 = vsub.f32 %v1961_v40, %v2168_v52  ;;  %v4685_v40 = vld [vmem:[%s6074_s6 + $0x58] sm:$0xff]  }
 0x472   :  { %v5773_v0 = vsub.f32 %v1963_v42, %v2172_v58  ;;  %v4687_v42 = vld [vmem:[%s6074_s6 + $0x60] sm:$0xff]  }
 0x473   :  { %v2175_v1 = vmul.f32 %v5771_v59, %v5771_v59 }
 0x474   :  { %v2176_v4 = vmul.f32 %v5773_v0, %v5773_v0 }
 0x475   :  { %v2177_v15 = vsel %vm2004_vm4, %v2175_v1, 0.0 }
 0x476   :  { %v2178_v16 = vrot.slane %v2177_v15, 4  ;;  %v2184_v13 = vsel %vm2004_vm4, %v2176_v4, 0.0 }
 0x477   :  { %v2185_v17 = vrot.slane %v2184_v13, 4 }
 0x478   :  { %v2179_v18 = vadd.f32 %v2178_v16, %v2177_v15 }
 0x479   :  { %v2186_v19 = vadd.f32 %v2185_v17, %v2184_v13  ;;  %v2534_v13 = vld [vmem:[%s6075_s7 + $0x50] sm:$0xff]  ;;  %v2535_v17 = vld [vmem:[%s6075_s7 + $0x58] sm:$0xff] }
 0x47a   :  { %v2180_v20 = vrot.slane %v2179_v18, 2 }
 0x47b   :  { %v2187_v21 = vrot.slane %v2186_v19, 2 }
 0x47c   :  { %v2181_v22 = vadd.f32 %v2180_v20, %v2179_v18  ;;  %v4173_v18 = vpack.c.bf16 %v2535_v17, %v2534_v13  ;;  %v2537_v20 = vld [vmem:[%s6075_s7 + $0x68] sm:$0xff] }
 0x47d   :  { %v2188_v23 = vadd.f32 %v2187_v21, %v2186_v19  ;;  %v2536_v19 = vld [vmem:[%s6075_s7 + $0x60] sm:$0xff] }
 0x47e   :  { %v2182_v24 = vrot.slane %v2181_v22, 1  ;;  %v4176_v21 = vpack.c.bf16 %v2537_v20, %v2536_v19  ;;  %v2970_v20 = vld [vmem:[%s6078_s10 + $0x10] sm:$0xff] }
 0x47f   :  { %v2189_v25 = vrot.slane %v2188_v23, 1 }
 0x480   :  { %v2183_v27 = vadd.f32 %v2182_v24, %v2181_v22  ;;  %v2538_v22 = vld [vmem:[%s6075_s7 + $0x70] sm:$0xff] }
 0x481   :  { %v2190_v26 = vadd.f32 %v2189_v25, %v2188_v23  ;;  %v2539_v23 = vld [vmem:[%s6075_s7 + $0x78] sm:$0xff] }
 0x482   :  { %v4179_v24 = vpack.c.bf16 %v2539_v23, %v2538_v22  ;;  %v2972_v23 = vld [vmem:[%s6078_s10 + $0x20] sm:$0xff] }
 0x483   :  { %2255 = vmatprep.mubr.f32.mxu1 %v2190_v26 }
 0x484   :  { %2256 = vmatmul.mubr.f32.vlgmr.msra.gmra.mrb[8].mxu1 %v2183_v27 }
 0x485   :  { %4156 = vmatpush1.bf16.msra.mxu1 %v4119_v6  ;;  %2331 = vmatprep.mubr.f32.mxu1 %v4717_v10 }
 0x486   :  { %3769 = vmatprep.subr.bf16.mxu1 %v4679_v28 }
 0x557   :  { %v3766_v29 = vpop.f32.mrb[8].mxu1 }
 0x558   :  { %v3767_v30 = vpop.f32.mrb[9].mxu1 }
 0x559   :  { %v3768_v31 = vadd.f32 %v3767_v30, %v3766_v29 }
 0x55b   :  { %v2261_v32 = vmul.f32 0.015625, %v3768_v31 }
 0x55d   :  { %v2262_v33 = vadd.f32 1e-05, %v2261_v32 }
 0x55f   :  { %4707 = vrsqrt.f32 %v2262_v33 }
 0x569   :  { %v4708_v36 = vpop.eup %4707 }
 0x56a   :  { %3662 = vmatmul.mubr.msk.f32.vlgmr.msra.gmra.mrb[10].mxu1 %vm2090_vm5, %v4708_v36  ;;  %v2541_v36 = vld [vmem:[%s6076_s8 + $0x8] sm:$0xff] }
 0x56b   :  { %3770 = vmatpush3.bf16.msra.mxu1 %v4680_v34 }
 0x56c   :  { %3771 = vmatprep.subr.bf16.mxu1 %v4681_v35  ;;  %v2540_v35 = vld [vmem:[%s6076_s8] sm:$0xff] }
 0x56f   :  { %3772 = vmatpush3.bf16.msra.mxu1 %v4682_v37 }
 0x570   :  { %3773 = vmatprep.subr.bf16.mxu1 %v4683_v38  ;;  %v4182_v38 = vpack.c.bf16 %v2541_v36, %v2540_v35  ;;  %v2980_v35 = vld [vmem:[%s6079_s11 + $0x20] sm:$0xff]  ;;  %v2981_v36 = vld [vmem:[%s6079_s11 + $0x28] sm:$0xff] }
 0x573   :  { %3774 = vmatpush3.bf16.msra.mxu1 %v4684_v39 }
 0x574   :  { %3775 = vmatprep.subr.bf16.mxu1 %v4685_v40  ;;  %v2542_v40 = vld [vmem:[%s6076_s8 + $0x10] sm:$0xff] }
 0x577   :  { %3776 = vmatpush3.bf16.msra.mxu1 %v4686_v41  ;;  %v2543_v41 = vld [vmem:[%s6076_s8 + $0x18] sm:$0xff] }
 0x578   :  { %3777 = vmatprep.subr.bf16.mxu1 %v4687_v42  ;;  %v4185_v42 = vpack.c.bf16 %v2543_v41, %v2542_v40 }
 0x57b   :  { %3778 = vmatpush3.bf16.msra.mxu1 %v4688_v43 }
 0x57c   :  { %3779 = vmatprep.subr.bf16.mxu1 %v4689_v44 }
 0x57f   :  { %3780 = vmatpush3.bf16.msra.mxu1 %v4690_v45 }
 0x580   :  { %3781 = vmatprep.subr.bf16.mxu1 %v4691_v46 }
 0x583   :  { %3782 = vmatpush3.bf16.msra.mxu1 %v4692_v47 }
 0x584   :  { %3783 = vmatprep.subr.bf16.mxu1 %v4693_v49 }
 0x587   :  { %3784 = vmatpush3.bf16.msra.mxu1 %v4694_v50 }
 0x588   :  { %4157 = vmatprep.subr.bf16.mxu1 %v4718_v51 }
 0x63d   :  { %v2333_v6 = vpop.f32.mrb[10].mxu1 }
 0x63e   :  { %v2341_v11 = vrot.slane %v2333_v6, %v5566_v7  ;;  %v2335_v8 = vpop.f32.mrb[11].mxu1  ;;  %v4695_v6 = vld [vmem:[%s6077_s9] sm:$0xff]  }
 0x63f   :  { %v2345_v12 = vrot.slane %v2335_v8, %v5566_v7  ;;  %v4696_v8 = vld [vmem:[%s6077_s9 + $0x8] sm:$0xff]  }
 0x640   :  { %v2346_v14 = vmul.f32 %v2341_v11, %v5771_v59  ;;  %v2532_v59 = vld [vmem:[%s6075_s7 + $0x40] sm:$0xff] }
 0x641   :  { %v2347_v48 = vmul.f32 %v2345_v12, %v5773_v0  ;;  %v2533_v0 = vld [vmem:[%s6075_s7 + $0x48] sm:$0xff]  ;;  %v4697_v12 = vld [vmem:[%s6077_s9 + $0x10] sm:$0xff]  }
 0x642   :  { %vm2348_vm6 = vcmp.gt.f32.partialorder %v2346_v14, 0.0  ;;  %v2350_v52 = vmul.f32 0.2, %v2346_v14  ;;  %v4170_v16 = vpack.c.bf16 %v2533_v0, %v2532_v59 }
 0x643   :  { %v2351_v53 = vmul.f32 0.2, %v2347_v48  ;;  %vm2349_vm7 = vcmp.gt.f32.partialorder %v2347_v48, 0.0 }
 0x644   :  { %v2352_v58 = vsel %vm2348_vm6, %v2346_v14, %v2350_v52  ;;  %4201 = vmatpush3.bf16.msra.mxu0 %v4170_v16  ;;  %v4698_v14 = vld [vmem:[%s6077_s9 + $0x18] sm:$0xff]   ;;  %v4700_v52 = vld [vmem:[%s6077_s9 + $0x28] sm:$0xff]  }
 0x645   :  { %v2353_v1 = vsel %vm2349_vm7, %v2347_v48, %v2351_v53  ;;  %v2386_v15 = vpack.c.bf16 %v2352_v58, %v2352_v58  ;;  %4202 = vmatprep.subr.bf16.mxu0 %v4718_v51  ;;  %v4699_v48 = vld [vmem:[%s6077_s9 + $0x20] sm:$0xff]   ;;  %v4701_v53 = vld [vmem:[%s6077_s9 + $0x30] sm:$0xff]   ;;  %v4702_v58 = vld [vmem:[%s6077_s9 + $0x38] sm:$0xff]  }
 0x646   :  { %v2387_v4 = vpack.c.bf16 %v2353_v1, %v2353_v1  ;;  %v2968_v1 = vld [vmem:[%s6078_s10] sm:$0xff] }
 0x648   :  { %2516 = vmatprep.mubr.bf16.mxu1 %v2387_v4  ;;  %4204 = vmatpush3.bf16.msra.mxu0 %v4173_v18  ;;  %v2969_v4 = vld [vmem:[%s6078_s10 + $0x8] sm:$0xff] }
 0x649   :  { %2517 = vmatmul.mubr.bf16.vlgmr.msra.gmra.mrb[12].mxu1 %v2386_v15  ;;  %4205 = vmatprep.subr.bf16.mxu0 %v4718_v51  ;;  %v4218_v15 = vpack.c.bf16 %v2969_v4, %v2968_v1 }
 0x64a   :  { %4159 = vmatpush3.bf16.msra.mxu1 %v4158_v56  ;;  %3917 = vmatprep.mubr.msk.f32.mxu1 %vm4719_vm8, %v4717_v10 }
 0x64b   :  { %4160 = vmatprep.subr.bf16.mxu1 %v4718_v51 }
 0x64c   :  { %4207 = vmatpush3.bf16.msra.mxu0 %v4176_v21 }
 0x64d   :  { %4208 = vmatprep.subr.bf16.mxu0 %v4718_v51 }
 0x64e   :  { %4162 = vmatpush3.bf16.msra.mxu1 %v4161_v61 }
 0x64f   :  { %4163 = vmatprep.subr.bf16.mxu1 %v4718_v51 }
 0x650   :  { %4210 = vmatpush3.bf16.msra.mxu0 %v4179_v24 }
 0x651   :  { %4217 = vmatprep.subr.bf16.mxu0 %v4718_v51 }
 0x652   :  { %4165 = vmatpush3.bf16.msra.mxu1 %v4164_v2 }
 0x653   :  { %4166 = vmatprep.subr.bf16.mxu1 %v4718_v51 }
 0x656   :  { %4168 = vmatpush3.bf16.msra.mxu1 %v4167_v9 }
 0x657   :  { %4169 = vmatprep.subr.bf16.mxu1 %v4718_v51 }
 0x65a   :  { %4171 = vmatpush3.bf16.msra.mxu1 %v4170_v16 }
 0x65b   :  { %4172 = vmatprep.subr.bf16.mxu1 %v4718_v51 }
 0x65e   :  { %4174 = vmatpush3.bf16.msra.mxu1 %v4173_v18 }
 0x65f   :  { %4175 = vmatprep.subr.bf16.mxu1 %v4718_v51 }
 0x662   :  { %4177 = vmatpush3.bf16.msra.mxu1 %v4176_v21  ;;  %v2971_v21 = vld [vmem:[%s6078_s10 + $0x18] sm:$0xff] }
 0x663   :  { %4178 = vmatprep.subr.bf16.mxu1 %v4718_v51  ;;  %v4221_v22 = vpack.c.bf16 %v2971_v21, %v2970_v20 }
 0x666   :  { %4180 = vmatpush3.bf16.msra.mxu1 %v4179_v24  ;;  %v2973_v24 = vld [vmem:[%s6078_s10 + $0x28] sm:$0xff] }
 0x667   :  { %4181 = vmatprep.subr.bf16.mxu1 %v4718_v51 }
 0x71c   :  { %v3785_v25 = vpop.f32.mrb[12].mxu1 }
 0x71d   :  { %v3786_v26 = vpop.f32.mrb[13].mxu1 }
 0x71e   :  { %v3787_v27 = vadd.f32 %v3786_v26, %v3785_v25  ;;  %v3788_v28 = vpop.f32.mrb[14].mxu1  ;;  %v4224_v25 = vpack.c.bf16 %v2973_v24, %v2972_v23  ;;  %v2974_v26 = vld [vmem:[%s6078_s10 + $0x30] sm:$0xff] }
 0x71f   :  { %v3789_v29 = vpop.f32.mrb[15].mxu1 }
 0x720   :  { %v2544_v30 = vsel %vm2004_vm4, %v3787_v27, 0.0  ;;  %v2976_v29 = vld [vmem:[%s6079_s11] sm:$0xff] }
 0x721   :  { %v2545_v31 = vrot.slane %v2544_v30, 4 }
 0x723   :  { %v2546_v32 = vadd.f32 %v2545_v31, %v2544_v30  ;;  %v2977_v30 = vld [vmem:[%s6079_s11 + $0x8] sm:$0xff]  ;;  %v2978_v31 = vld [vmem:[%s6079_s11 + $0x10] sm:$0xff] }
 0x725   :  { %v2547_v33 = vrot.slane %v2546_v32, 2 }
 0x727   :  { %v2548_v34 = vadd.f32 %v2547_v33, %v2546_v32  ;;  %v4230_v32 = vpack.c.bf16 %v2977_v30, %v2976_v29  ;;  %v2979_v33 = vld [vmem:[%s6079_s11 + $0x18] sm:$0xff] }
 0x729   :  { %v2549_v37 = vrot.slane %v2548_v34, 1 }
 0x72b   :  { %v2550_v39 = vadd.f32 %v2549_v37, %v2548_v34  ;;  %v4233_v34 = vpack.c.bf16 %v2979_v33, %v2978_v31  ;;  %v4236_v37 = vpack.c.bf16 %v2981_v36, %v2980_v35 }
 0x72d   :  { %3918 = vmatmul.mubr.f32.vlgmr.msra.gmra.mrb[16].mxu1 %v2550_v39 }
 0x72e   :  { %4183 = vmatpush3.bf16.msra.mxu1 %v4182_v38  ;;  %3928 = vmatprep.mubr.msk.f32.mxu1 %vm4719_vm8, %v4717_v10 }
 0x72f   :  { %4184 = vmatprep.subr.bf16.mxu1 %v4718_v51 }
 0x732   :  { %4186 = vmatpush3.bf16.msra.mxu1 %v4185_v42 }
 0x733   :  { %4211 = vmatprep.subr.bf16.mxu1 %v4718_v51 }
 0x800   :  { %v2617_v43 = vpop.f32.mrb[16].mxu1 }
 0x801   :  { %v2621_v44 = vmul.f32 0.0625, %v2617_v43  ;;  %v3919_v45 = vpop.f32.mrb[17].mxu1 }
 0x803   :  { %3929 = vmatmul.mubr.msk.f32.vlgmr.msra.gmra.mrb[18].mxu1 %vm2622_vm9, %v2621_v44 }
 0x804   :  { %4213 = vmatpush3.bf16.msra.mxu1 %v4182_v38  ;;  %3974 = vmatprep.mubr.msk.f32.mxu1 %vm4719_vm8, %v4717_v10 }
 0x805   :  { %4214 = vmatprep.subr.bf16.mxu1 %v4718_v51 }
 0x808   :  { %4216 = vmatpush3.bf16.msra.mxu1 %v4185_v42 }
 0x809   :  { %3977 = vmatprep.subr.bf16.mxu1 %v4717_v10 }
 0x8d6   :  { %v2692_v46 = vpop.f32.mrb[18].mxu1 }
 0x8d7   :  { %v2699_v47 = vrot.slane %v2692_v46, %v5566_v7  ;;  %v3930_v49 = vpop.f32.mrb[19].mxu1 }
 0x8d9   :  { %v2700_v50 = vsub.f32 %v3787_v27, %v2699_v47  ;;  %v2975_v27 = vld [vmem:[%s6078_s10 + $0x38] sm:$0xff] }
 0x8da   :  { %v4227_v28 = vpack.c.bf16 %v2975_v27, %v2974_v26 }
 0x8db   :  { %v2701_v54 = vmul.f32 %v2700_v50, %v2700_v50 }
 0x8dd   :  { %v2702_v55 = vsel %vm2004_vm4, %v2701_v54, 0.0  ;;  %v2983_v54 = vld [vmem:[%s6079_s11 + $0x38] sm:$0xff] }
 0x8de   :  { %v2703_v56 = vrot.slane %v2702_v55, 4 }
 0x8e0   :  { %v2704_v57 = vadd.f32 %v2703_v56, %v2702_v55 }
 0x8e2   :  { %v2705_v60 = vrot.slane %v2704_v57, 2 }
 0x8e4   :  { %v2706_v61 = vadd.f32 %v2705_v60, %v2704_v57 }
 0x8e6   :  { %v2707_v62 = vrot.slane %v2706_v61, 1 }
 0x8e8   :  { %v2708_v63 = vadd.f32 %v2707_v62, %v2706_v61 }
 0x8ea   :  { %3964 = vmatmul.mubr.f32.vlgmr.msra.gmra.mrb[8].mxu0 %v2708_v63 }
 0x8eb   :  { %4013 = vmatprep.mubr.msk.f32.mxu0 %vm4719_vm8, %v4717_v10  ;;  %4219 = vmatpush3.bf16.msra.mxu0 %v4218_v15 }
 0x8ec   :  { %4220 = vmatprep.subr.bf16.mxu0 %v4718_v51 }
 0x8ef   :  { %4222 = vmatpush3.bf16.msra.mxu0 %v4221_v22 }
 0x8f0   :  { %4223 = vmatprep.subr.bf16.mxu0 %v4718_v51 }
 0x8f3   :  { %4225 = vmatpush3.bf16.msra.mxu0 %v4224_v25 }
 0x8f4   :  { %4226 = vmatprep.subr.bf16.mxu0 %v4718_v51 }
 0x8f7   :  { %4228 = vmatpush3.bf16.msra.mxu0 %v4227_v28 }
 0x8f8   :  { %4241 = vmatprep.subr.bf16.mxu0 %v4718_v51 }
 0x9bd   :  { %v2775_v2 = vpop.f32.mrb[8].mxu0 }
 0x9be   :  { %v2779_v3 = vmul.f32 0.0625, %v2775_v2  ;;  %v3965_v5 = vpop.f32.mrb[9].mxu0 }
 0x9c0   :  { %v2780_v9 = vadd.f32 1e-05, %v2779_v3 }
 0x9c2   :  { %4709 = vrsqrt.f32 %v2780_v9 }
 0x9cc   :  { %v4710_v11 = vpop.eup %4709 }
 0x9cd   :  { %3975 = vmatmul.mubr.msk.f32.vlgmr.msra.gmra.mrb[20].mxu1 %vm2622_vm9, %v4710_v11 }
 0x9ce   :  { %3978 = vmatpush3.bf16.msra.mxu1 %v4695_v6  ;;  %3993 = vmatprep.mubr.msk.bf16.mxu1 %vm4719_vm8, %v4717_v10 }
 0x9cf   :  { %3979 = vmatprep.subr.bf16.mxu1 %v4717_v10 }
 0x9d2   :  { %3980 = vmatpush3.bf16.msra.mxu1 %v4696_v8 }
 0x9d3   :  { %3981 = vmatprep.subr.bf16.mxu1 %v4717_v10 }
 0x9d6   :  { %3982 = vmatpush3.bf16.msra.mxu1 %v4697_v12 }
 0x9d7   :  { %3983 = vmatprep.subr.bf16.mxu1 %v4717_v10 }
 0x9da   :  { %3984 = vmatpush3.bf16.msra.mxu1 %v4698_v14 }
 0x9db   :  { %3985 = vmatprep.subr.bf16.mxu1 %v4717_v10 }
 0x9de   :  { %3986 = vmatpush3.bf16.msra.mxu1 %v4699_v48  ;;  %v4704_v48 = vld [vmem:[%s6080_s12 + $0x8] sm:$0xff]  }
 0x9df   :  { %3987 = vmatprep.subr.bf16.mxu1 %v4717_v10 }
 0x9e2   :  { %3988 = vmatpush3.bf16.msra.mxu1 %v4700_v52 }
 0x9e3   :  { %3989 = vmatprep.subr.bf16.mxu1 %v4717_v10 }
 0x9e6   :  { %3990 = vmatpush3.bf16.msra.mxu1 %v4701_v53 }
 0x9e7   :  { %3991 = vmatprep.subr.bf16.mxu1 %v4717_v10 }
 0x9ea   :  { %3992 = vmatpush3.bf16.msra.mxu1 %v4702_v58 }
 0x9eb   :  { %4229 = vmatprep.subr.bf16.mxu1 %v4718_v51 }
 0xaa0   :  { %v2851_v59 = vpop.f32.mrb[20].mxu1 }
 0xaa1   :  { %v2858_v0 = vrot.slane %v2851_v59, %v5566_v7  ;;  %v3976_v16 = vpop.f32.mrb[21].mxu1  ;;  %v4706_v59 = vld [vmem:[%s6080_s12 + $0x18] sm:$0xff]  }
 0xaa3   :  { %v2859_v13 = vmul.f32 %v2858_v0, %v2700_v50  ;;  %v2982_v50 = vld [vmem:[%s6079_s11 + $0x30] sm:$0xff] }
 0xaa4   :  { %v4239_v55 = vpack.c.bf16 %v2983_v54, %v2982_v50 }
 0xaa5   :  { %vm2860_vm10 = vcmp.gt.f32.partialorder %v2859_v13, 0.0  ;;  %v2861_v17 = vmul.f32 0.2, %v2859_v13 }
 0xaa7   :  { %v2862_v18 = vsel %vm2860_vm10, %v2859_v13, %v2861_v17 }
 0xaa8   :  { %v2879_v19 = vpack.c.bf16 %v2862_v18, %v2862_v18 }
 0xaaa   :  { %3994 = vmatmul.mubr.bf16.vlgmr.msra.gmra.mrb[24].mxu1 %v2879_v19 }
 0xaab   :  { %4032 = vmatprep.mubr.msk.f32.mxu1 %vm4719_vm8, %v4717_v10  ;;  %4231 = vmatpush3.bf16.msra.mxu1 %v4230_v32 }
 0xaac   :  { %4232 = vmatprep.subr.bf16.mxu1 %v4718_v51 }
 0xaaf   :  { %4234 = vmatpush3.bf16.msra.mxu1 %v4233_v34 }
 0xab0   :  { %4235 = vmatprep.subr.bf16.mxu1 %v4718_v51 }
 0xab3   :  { %4237 = vmatpush3.bf16.msra.mxu1 %v4236_v37 }
 0xab4   :  { %4238 = vmatprep.subr.bf16.mxu1 %v4718_v51 }
 0xab7   :  { %4240 = vmatpush3.bf16.msra.mxu1 %v4239_v55 }
 0xab8   :  { %4253 = vmatprep.subr.bf16.mxu1 %v4718_v51 }
 0xb7d   :  { %v2962_v38 = vpop.f32.mrb[24].mxu1 }
 0xb7e   :  { %v2985_v39 = vsel %vm2984_vm11, %v2962_v38, 0.0  ;;  %v3995_v40 = vpop.f32.mrb[25].mxu1 }
 0xb7f   :  { %v2986_v41 = vrot.slane %v2985_v39, 4  ;;  %v2965_v42 = vpop.f32.mrb[26].mxu1 }
 0xb80   :  { %v3996_v43 = vpop.f32.mrb[27].mxu1 }
 0xb81   :  { %v2987_v44 = vadd.f32 %v2986_v41, %v2985_v39 }
 0xb83   :  { %v2988_v45 = vrot.slane %v2987_v44, 2 }
 0xb85   :  { %v2989_v46 = vadd.f32 %v2988_v45, %v2987_v44 }
 0xb87   :  { %v2990_v47 = vrot.slane %v2989_v46, 1 }
 0xb89   :  { %v2991_v49 = vadd.f32 %v2990_v47, %v2989_v46 }
 0xb8b   :  { %4014 = vmatmul.mubr.msk.f32.vlgmr.msra.gmra.mrb[10].mxu0 %vm2992_vm12, %v2991_v49 }
 0xb8c   :  { %4243 = vmatpush3.bf16.msra.mxu0 %v4218_v15  ;;  %4051 = vmatprep.mubr.msk.f32.mxu0 %vm4719_vm8, %v4717_v10  ;;  %v4705_v15 = vld [vmem:[%s6080_s12 + $0x10] sm:$0xff]  }
 0xb8d   :  { %4244 = vmatprep.subr.bf16.mxu0 %v4718_v51 }
 0xb90   :  { %4246 = vmatpush3.bf16.msra.mxu0 %v4221_v22 }
 0xb91   :  { %4247 = vmatprep.subr.bf16.mxu0 %v4718_v51 }
 0xb94   :  { %4249 = vmatpush3.bf16.msra.mxu0 %v4224_v25 }
 0xb95   :  { %4250 = vmatprep.subr.bf16.mxu0 %v4718_v51 }
 0xb98   :  { %4252 = vmatpush3.bf16.msra.mxu0 %v4227_v28 }
 0xb99   :  { %4073 = vmatprep.subr.bf16.mxu0 %v4717_v10 }
 0xc5e   :  { %v3062_v56 = vpop.f32.mrb[10].mxu0 }
 0xc5f   :  { %v3066_v57 = vmul.f32 0.25, %v3062_v56  ;;  %v4015_v60 = vpop.f32.mrb[11].mxu0 }
 0xc61   :  { %4033 = vmatmul.mubr.msk.f32.vlgmr.msra.gmra.mrb[22].mxu1 %vm2992_vm12, %v3066_v57 }
 0xc62   :  { %4255 = vmatpush3.bf16.msra.mxu1 %v4230_v32  ;;  %4070 = vmatprep.mubr.msk.f32.mxu1 %vm4719_vm8, %v4717_v10 }
 0xc63   :  { %4256 = vmatprep.subr.bf16.mxu1 %v4718_v51 }
 0xc66   :  { %4258 = vmatpush3.bf16.msra.mxu1 %v4233_v34 }
 0xc67   :  { %4259 = vmatprep.subr.bf16.mxu1 %v4718_v51 }
 0xc6a   :  { %4261 = vmatpush3.bf16.msra.mxu1 %v4236_v37 }
 0xc6b   :  { %4262 = vmatprep.subr.bf16.mxu1 %v4718_v51  ;;  %v4703_v51 = vld [vmem:[%s6080_s12] sm:$0xff]  }
 0xc6e   :  { %4264 = vmatpush3.bf16.msra.mxu1 %v4239_v55 }
 0xd34   :  { %v3136_v61 = vpop.f32.mrb[22].mxu1 }
 0xd35   :  { %v3143_v62 = vrot.slane %v3136_v61, %v5566_v7  ;;  %v4034_v63 = vpop.f32.mrb[23].mxu1 }
 0xd37   :  { %v3144_v2 = vsub.f32 %v2962_v38, %v3143_v62 }
 0xd39   :  { %v3145_v3 = vmul.f32 %v3144_v2, %v3144_v2 }
 0xd3b   :  { %v3146_v5 = vsel %vm2984_vm11, %v3145_v3, 0.0 }
 0xd3c   :  { %v3147_v9 = vrot.slane %v3146_v5, 4 }
 0xd3e   :  { %v3148_v6 = vadd.f32 %v3147_v9, %v3146_v5 }
 0xd40   :  { %v3149_v11 = vrot.slane %v3148_v6, 2 }
 0xd42   :  { %v3150_v8 = vadd.f32 %v3149_v11, %v3148_v6 }
 0xd44   :  { %v3151_v12 = vrot.slane %v3150_v8, 1 }
 0xd46   :  { %v3152_v14 = vadd.f32 %v3151_v12, %v3150_v8 }
 0xd48   :  { %4052 = vmatmul.mubr.msk.f32.vlgmr.msra.gmra.mrb[12].mxu0 %vm2992_vm12, %v3152_v14 }
 0xd49   :  { %4081 = vmatprep.mubr.msk.bf16.mxu0 %vm4719_vm8, %v4717_v10  ;;  %4074 = vmatpush3.bf16.msra.mxu0 %v4703_v51 }
 0xd4a   :  { %4075 = vmatprep.subr.bf16.mxu0 %v4717_v10 }
 0xd4d   :  { %4076 = vmatpush3.bf16.msra.mxu0 %v4704_v48 }
 0xd4e   :  { %4077 = vmatprep.subr.bf16.mxu0 %v4717_v10 }
 0xd51   :  { %4078 = vmatpush3.bf16.msra.mxu0 %v4705_v15 }
 0xd52   :  { %4079 = vmatprep.subr.bf16.mxu0 %v4717_v10  ;;  %v3693_v10 = vld [vmem:[%s6081_s13] ss:$0 sm:$0xff] }
 0xd55   :  { %4080 = vmatpush3.bf16.msra.mxu0 %v4706_v59 }
 0xe1b   :  { %v3222_v52 = vpop.f32.mrb[12].mxu0 }
 0xe1c   :  { %v3226_v53 = vmul.f32 0.25, %v3222_v52  ;;  %v4053_v58 = vpop.f32.mrb[13].mxu0 }
 0xe1e   :  { %v3227_v1 = vadd.f32 1e-05, %v3226_v53 }
 0xe20   :  { %4711 = vrsqrt.f32 %v3227_v1 }
 0xe2a   :  { %v4712_v4 = vpop.eup %4711 }
 0xe2b   :  { %4071 = vmatmul.mubr.msk.f32.vlgmr.msra.gmra.mrb[28].mxu1 %vm2992_vm12, %v4712_v4 }
 0xefe   :  { %v3298_v0 = vpop.f32.mrb[28].mxu1 }
 0xeff   :  { %v3305_v16 = vrot.slane %v3298_v0, %v5566_v7  ;;  %v4072_v13 = vpop.f32.mrb[29].mxu1 }
 0xf01   :  { %v3306_v17 = vmul.f32 %v3305_v16, %v3144_v2 }
 0xf03   :  { %vm3307_vm13 = vcmp.gt.f32.partialorder %v3306_v17, 0.0  ;;  %v3308_v18 = vmul.f32 0.2, %v3306_v17 }
 0xf05   :  { %v3309_v19 = vsel %vm3307_vm13, %v3306_v17, %v3308_v18 }
 0xf06   :  { %v3318_v20 = vpack.c.bf16 %v3309_v19, %v3309_v19 }
 0xf08   :  { %4082 = vmatmul.mubr.msk.bf16.vlgmr.msra.gmra.mrb[16].mxu0 %vm2992_vm12, %v3318_v20 }
 0xfdb   :  { %v3387_v21 = vpop.f32.mrb[16].mxu0 }
 0xfdc   :  { %v3388_v22 = vadd.f32 %v3693_v10, %v3387_v21  ;;  %v4083_v23 = vpop.f32.mrb[17].mxu0 }
 0xfdd   :  { %v3390_v24 = vpop.f32.mrb[18].mxu0 }
 0xfde   :  { %v3393_v25 = vsub.f32 0.0, %v3388_v22  ;;  %v4084_v26 = vpop.f32.mrb[19].mxu0 }
 0xfe0   :  { %v3394_v27 = vmul.f32 1.442695, %v3393_v25 }
 0xfe2   :  { %4713 = vpow2.f32 %v3394_v27 }
 0xfec   :  { %v4714_v7 = vpop.eup %4713 }
 0xfed   :  { %v3396_v28 = vadd.f32 1.0, %v4714_v7 }
 0xfef   :  { %4715 = vrcp.f32 %v3396_v28 }
 0xff9   :  { %v4716_v29 = vpop.eup %4715 }
 0xffa   :  { %3400 = vst.msk [vmem:[%s6082_s14] sm:$0xf] %vm3399_vm14, %v4716_v29 }

</bundles_post_ra>
